<compile_context>
chip_gen: v7x
topology: tpu7x:2x2x1
jax: 0.10.0
libtpu: 0.0.40
codegen_flags: <defaults>
</compile_context>

<pallas_src>
import math

import numpy as np
import jax
import jax.numpy as jnp
from jax.experimental import pallas as pl
from jax.experimental.pallas import tpu as pltpu


# ---------------------------------------------------------------------------
# Host-side construction of the (static) spatial resampling matrices.
# ---------------------------------------------------------------------------
def _avg_pool_matrix(size, k):
    """(size//k, size) matrix implementing 1-D AvgPool(kernel=k, stride=k)."""
    out = size // k
    m = np.zeros((out, size), np.float64)
    for i in range(out):
        m[i, i * k:(i + 1) * k] = 1.0 / k
    return m


def _upsample_matrix(n, N):
    """(N, n) matrix implementing 1-D linear resize with align_corners=True."""
    m = np.zeros((N, n), np.float64)
    if n == 1:
        m[:, 0] = 1.0
        return m
    scale = (n - 1) / (N - 1)
    for i in range(N):
        src = i * scale
        i0 = min(int(np.floor(src)), n - 1)
        i1 = min(i0 + 1, n - 1)
        f = src - i0
        m[i, i0] += 1.0 - f
        m[i, i1] += f
    return m


def _spatial_resample_mats(H, W, k, dtype):
    """Returns (kpool_t, kup_t): shapes (H*W, hs*ws) and (hs*ws, H*W)."""
    hs, ws = H // k, W // k
    kpool = np.kron(_avg_pool_matrix(H, k), _avg_pool_matrix(W, k))    # (hs*ws, H*W)
    kup = np.kron(_upsample_matrix(hs, H), _upsample_matrix(ws, W))    # (H*W, hs*ws)
    return (jnp.asarray(kpool.T, dtype), jnp.asarray(kup.T, dtype))


# ---------------------------------------------------------------------------
# One-time parameter preparation (hoisted out of the forward pass).
# ---------------------------------------------------------------------------
def prepare_multi_ca_params(params, bins, H, W, mxu_dtype=jnp.bfloat16):
    C = params["wf"].shape[0]
    wf = jnp.asarray(params["wf"], mxu_dtype)                  # (C, 5C), concat order
    branches, meta = [], []
    for bi, bn in enumerate(bins):
        p = params["branches"][bi]
        hs, ws = H // bn, W // bn
        resample = not (hs == H and ws == W)
        C8 = p["w1"].shape[0]
        brefs = [
            jnp.asarray(p["w"], mxu_dtype),                    # (C, C)   MXU operand
            jnp.asarray(p["b"], jnp.float32).reshape(C, 1),    # (C, 1)   f32 bias
            jnp.asarray(p["w1"], jnp.float32).T,               # (C, C8)  CA conv1^T
            jnp.asarray(p["b1"], jnp.float32).reshape(1, C8),  # (1, C8)
            jnp.asarray(p["w2"], jnp.float32),                 # (C, C8)  CA conv2
            jnp.asarray(p["b2"], jnp.float32).reshape(C, 1),   # (C, 1)
        ]
        if resample:
            brefs += list(_spatial_resample_mats(H, W, bn, mxu_dtype))
        branches.append(brefs)
        meta.append({"n": hs * ws, "resample": resample})
    return {"wf": wf, "branches": branches, "meta": meta, "C": C, "H": H, "W": W}


# ---------------------------------------------------------------------------
# Pallas kernel
# ---------------------------------------------------------------------------
def _make_multi_ca_kernel(branch_meta, C):
    def kernel(*refs):
        x_ref, wf_ref = refs[0], refs[1]
        o_ref, stage_ref = refs[-2], refs[-1]

        x = x_ref[0]                                            # (C, HW) f32, lane-dense
        # Identity slice of the concat -> rows [0, C) of the staging buffer.
        stage_ref[pl.ds(0, C), :] = x.astype(jnp.bfloat16)

        idx = 2
        for bi, meta in enumerate(branch_meta):
            w_ref, b_ref, w1t_ref, b1_ref, w2_ref, b2_ref = refs[idx:idx + 6]
            idx += 6
            if meta["resample"]:
                kpool_t_ref, kup_t_ref = refs[idx:idx + 2]
                idx += 2
                # AvgPool2d(bin) as a single (C,HW) x (HW, hs*ws) bf16 matmul.
                p = jnp.dot(x.astype(jnp.bfloat16), kpool_t_ref[...],
                            preferred_element_type=jnp.float32)           # (C, n)
            else:
                p = x                                    # bin == 1: identity

            # 1x1 conv (dim -> dim, bias): bf16 operands, f32 accumulate.
            c = jnp.dot(w_ref[...], p.astype(jnp.bfloat16),
                        preferred_element_type=jnp.float32) + b_ref[...]   # (C, n)

            # CALayer: global average pool + 2-layer MLP + sigmoid gate (f32).
            m = jnp.sum(c, axis=1, keepdims=True) * (1.0 / meta["n"])      # (C, 1)
            h = jnp.maximum(
                jnp.sum(w1t_ref[...] * m, axis=0, keepdims=True)
                + b1_ref[...], 0.0)                                        # (1, C//8)
            s = jax.nn.sigmoid(
                jnp.sum(w2_ref[...] * h, axis=1, keepdims=True)
                + b2_ref[...])                                             # (C, 1)
            a = c * s                                                      # (C, n) f32

            if meta["resample"]:
                # Bilinear upsample (align_corners=True) as one bf16 matmul.
                u = jnp.dot(a.astype(jnp.bfloat16), kup_t_ref[...],
                            preferred_element_type=jnp.float32)            # (C, HW)
            else:
                u = a

            # Stage this branch's block of the concat (rows [(bi+1)*C, (bi+2)*C)).
            stage_ref[pl.ds((bi + 1) * C, C), :] = u.astype(jnp.bfloat16)

        # Single fused cov2: (C, 5C) x (5C, HW) matmul with K = 5C.
        acc = jnp.dot(wf_ref[...], stage_ref[...],
                      preferred_element_type=jnp.float32)                  # (C, HW)
        o_ref[0] = acc.astype(o_ref.dtype)

    return kernel


# ---------------------------------------------------------------------------
# Wrapper
# ---------------------------------------------------------------------------
def multi_ca_forward(x, prep):
    """x: (B, dim, H, W) NCHW.  prep: output of prepare_multi_ca_params."""
    B, C, H, W = x.shape
    assert C == prep["C"] and H == prep["H"] and W == prep["W"]
    HW = H * W

    x_flat = x.reshape(B, C, HW)                       # free reshape, lane-dense

    def _const_map(ndim):
        zeros = (0,) * ndim
        return lambda b: zeros

    inputs = [x_flat, prep["wf"]]
    in_specs = [
        pl.BlockSpec((1, C, HW), lambda b: (b, 0, 0)),
        pl.BlockSpec(prep["wf"].shape, _const_map(2)),
    ]
    for brefs in prep["branches"]:
        for arr in brefs:
            inputs.append(arr)
            in_specs.append(pl.BlockSpec(arr.shape, _const_map(arr.ndim)))

    # Advisory cost estimate so XLA schedules the custom call sensibly.
    flops = 2 * C * (5 * C) * HW                          # fused cov2 matmul
    for m in prep["meta"]:
        n = m["n"]
        flops += 2 * C * C * n                            # branch 1x1 conv
        if m["resample"]:
            flops += 2 * C * HW * n + 2 * C * n * HW      # pool + upsample matmuls
    flops *= B
    transcendentals = B * len(prep["meta"]) * C           # sigmoid gates
    bytes_accessed = 2 * int(x_flat.size) * x_flat.dtype.itemsize
    bytes_accessed += sum(int(a.size) * a.dtype.itemsize for a in inputs[1:])
    cost = pl.CostEstimate(flops=int(flops),
                           transcendentals=int(transcendentals),
                           bytes_accessed=int(bytes_accessed))

    out = pl.pallas_call(
        _make_multi_ca_kernel(prep["meta"], C),
        out_shape=jax.ShapeDtypeStruct((B, C, HW), x.dtype),
        grid_spec=pltpu.PrefetchScalarGridSpec(
            num_scalar_prefetch=0,
            grid=(B,),
            in_specs=in_specs,
            out_specs=pl.BlockSpec((1, C, HW), lambda b: (b, 0, 0)),
            scratch_shapes=[pltpu.VMEM((5 * C, HW), jnp.bfloat16)],  # concat staging
        ),
        compiler_params=pltpu.CompilerParams(
            dimension_semantics=("parallel",)),
        cost_estimate=cost,
    )(*inputs)

    return out.reshape(B, C, H, W)


# ---------------------------------------------------------------------------
# Pure-JAX reference (independent code path, full f32)
# ---------------------------------------------------------------------------
def _bilinear_resize_ac(x, H, W):
    """(B, C, h, w) -> (B, C, H, W), bilinear, align_corners=True."""
    _, _, h, w = x.shape

    def coords(n, N):
        if n == 1:
            z = jnp.zeros((N,), jnp.int32)
            return z, z, jnp.zeros((N,), jnp.float32)
        src = jnp.arange(N, dtype=jnp.float32) * ((n - 1) / (N - 1))
        i0 = jnp.clip(jnp.floor(src).astype(jnp.int32), 0, n - 1)
        i1 = jnp.minimum(i0 + 1, n - 1)
        return i0, i1, src - i0.astype(jnp.float32)

    i0, i1, fy = coords(h, H)
    j0, j1, fx = coords(w, W)
    rows = (x[:, :, i0, :] * (1.0 - fy)[None, None, :, None]
            + x[:, :, i1, :] * fy[None, None, :, None])
    return (rows[:, :, :, j0] * (1.0 - fx)[None, None, None, :]
            + rows[:, :, :, j1] * fx[None, None, None, :])


def multi_ca_ref(x, params, bins):
    B, C, H, W = x.shape
    outs = [x]
    for bi, bn in enumerate(bins):
        p = params["branches"][bi]
        if bn == 1:
            xp = x
        else:
            xp = jax.lax.reduce_window(
                x, 0.0, jax.lax.add, (1, 1, bn, bn), (1, 1, bn, bn), "VALID"
            ) / float(bn * bn)
        c = jnp.einsum("oc,bchw->bohw", p["w"], xp) + p["b"][None, :, None, None]
        m = jnp.mean(c, axis=(2, 3))                              # (B, C)
        h = jax.nn.relu(m @ p["w1"].T + p["b1"])                  # (B, C//8)
        s = jax.nn.sigmoid(h @ p["w2"].T + p["b2"])               # (B, C)
        a = c * s[:, :, None, None]
        outs.append(_bilinear_resize_ac(a, H, W))
    cat = jnp.concatenate(outs, axis=1)                           # (B, 5C, H, W)
    return jnp.einsum("oc,bchw->bohw", params["wf"], cat)


if __name__ == "__main__":
    key = jax.random.PRNGKey(0)
    B, dim, H, W = 2, 32, 16, 16
    bins = [1, 2, 3, 6]
    C8 = dim // 8

    keys = iter(jax.random.split(key, 1 + 6 * len(bins) + 1))
    x = jax.random.normal(next(keys), (B, dim, H, W), jnp.float32)

    branches = []
    for _ in bins:
        branches.append(dict(
            w=jax.random.normal(next(keys), (dim, dim), jnp.float32) / math.sqrt(dim),
            b=0.1 * jax.random.normal(next(keys), (dim,), jnp.float32),
            w1=jax.random.normal(next(keys), (C8, dim), jnp.float32) / math.sqrt(dim),
            b1=0.1 * jax.random.normal(next(keys), (C8,), jnp.float32),
            w2=jax.random.normal(next(keys), (dim, C8), jnp.float32) / math.sqrt(C8),
            b2=0.1 * jax.random.normal(next(keys), (dim,), jnp.float32),
        ))
    wf = jax.random.normal(next(keys), (dim, 5 * dim), jnp.float32) / math.sqrt(5 * dim)
    params = dict(branches=branches, wf=wf)

    prep = prepare_multi_ca_params(params, bins, H, W)     # one-time param packing
    out = jax.block_until_ready(multi_ca_forward(x, prep))
    assert out.shape == (B, dim, H, W), out.shape

    ref = multi_ca_ref(x, params, bins)
    max_err = float(jnp.max(jnp.abs(out - ref)))
    # MXU operands are bf16 (f32 accumulation), so the tolerance vs the pure-f32
    # reference is loosened from 1e-4 accordingly (expected max err ~3e-2).
    assert max_err < 2e-1, f"max abs err too large: {max_err}"

    print("KERNEL_OK")
</pallas_src>

<mosaic_0001>
module attributes {stable_mosaic.version = 11 : i64} {
  func.func @kernel(%arg0: i32, %arg1: memref<1x32x256xf32, #tpu.memory_space<vmem>>, %arg2: memref<32x160xbf16, #tpu.memory_space<vmem>>, %arg3: memref<32x32xbf16, #tpu.memory_space<vmem>>, %arg4: memref<32x1xf32, #tpu.memory_space<vmem>>, %arg5: memref<32x4xf32, #tpu.memory_space<vmem>>, %arg6: memref<1x4xf32, #tpu.memory_space<vmem>>, %arg7: memref<32x4xf32, #tpu.memory_space<vmem>>, %arg8: memref<32x1xf32, #tpu.memory_space<vmem>>, %arg9: memref<32x32xbf16, #tpu.memory_space<vmem>>, %arg10: memref<32x1xf32, #tpu.memory_space<vmem>>, %arg11: memref<32x4xf32, #tpu.memory_space<vmem>>, %arg12: memref<1x4xf32, #tpu.memory_space<vmem>>, %arg13: memref<32x4xf32, #tpu.memory_space<vmem>>, %arg14: memref<32x1xf32, #tpu.memory_space<vmem>>, %arg15: memref<256x64xbf16, #tpu.memory_space<vmem>>, %arg16: memref<64x256xbf16, #tpu.memory_space<vmem>>, %arg17: memref<32x32xbf16, #tpu.memory_space<vmem>>, %arg18: memref<32x1xf32, #tpu.memory_space<vmem>>, %arg19: memref<32x4xf32, #tpu.memory_space<vmem>>, %arg20: memref<1x4xf32, #tpu.memory_space<vmem>>, %arg21: memref<32x4xf32, #tpu.memory_space<vmem>>, %arg22: memref<32x1xf32, #tpu.memory_space<vmem>>, %arg23: memref<256x25xbf16, #tpu.memory_space<vmem>>, %arg24: memref<25x256xbf16, #tpu.memory_space<vmem>>, %arg25: memref<32x32xbf16, #tpu.memory_space<vmem>>, %arg26: memref<32x1xf32, #tpu.memory_space<vmem>>, %arg27: memref<32x4xf32, #tpu.memory_space<vmem>>, %arg28: memref<1x4xf32, #tpu.memory_space<vmem>>, %arg29: memref<32x4xf32, #tpu.memory_space<vmem>>, %arg30: memref<32x1xf32, #tpu.memory_space<vmem>>, %arg31: memref<256x4xbf16, #tpu.memory_space<vmem>>, %arg32: memref<4x256xbf16, #tpu.memory_space<vmem>>, %arg33: memref<1x32x256xf32, #tpu.memory_space<vmem>>, %arg34: memref<160x256xbf16, #tpu.memory_space<vmem>>) attributes {dimension_semantics = [#tpu.dimension_semantics<parallel>], iteration_bounds = array<i64: 2>, scalar_prefetch = 0 : i64, scratch_operands = 1 : i64, tpu.core_type = #tpu.core_type<tc>, window_params = [{transform_indices = @transform_0, window_bounds = array<i64: 1, 32, 256>}, {pipeline_mode = #tpu.pipeline_mode<synchronous>, transform_indices = @transform_1, window_bounds = array<i64: 32, 160>}, {pipeline_mode = #tpu.pipeline_mode<synchronous>, transform_indices = @transform_2, window_bounds = array<i64: 32, 32>}, {pipeline_mode = #tpu.pipeline_mode<synchronous>, transform_indices = @transform_3, window_bounds = array<i64: 32, 1>}, {pipeline_mode = #tpu.pipeline_mode<synchronous>, transform_indices = @transform_4, window_bounds = array<i64: 32, 4>}, {pipeline_mode = #tpu.pipeline_mode<synchronous>, transform_indices = @transform_5, window_bounds = array<i64: 1, 4>}, {pipeline_mode = #tpu.pipeline_mode<synchronous>, transform_indices = @transform_6, window_bounds = array<i64: 32, 4>}, {pipeline_mode = #tpu.pipeline_mode<synchronous>, transform_indices = @transform_7, window_bounds = array<i64: 32, 1>}, {pipeline_mode = #tpu.pipeline_mode<synchronous>, transform_indices = @transform_8, window_bounds = array<i64: 32, 32>}, {pipeline_mode = #tpu.pipeline_mode<synchronous>, transform_indices = @transform_9, window_bounds = array<i64: 32, 1>}, {pipeline_mode = #tpu.pipeline_mode<synchronous>, transform_indices = @transform_10, window_bounds = array<i64: 32, 4>}, {pipeline_mode = #tpu.pipeline_mode<synchronous>, transform_indices = @transform_11, window_bounds = array<i64: 1, 4>}, {pipeline_mode = #tpu.pipeline_mode<synchronous>, transform_indices = @transform_12, window_bounds = array<i64: 32, 4>}, {pipeline_mode = #tpu.pipeline_mode<synchronous>, transform_indices = @transform_13, window_bounds = array<i64: 32, 1>}, {pipeline_mode = #tpu.pipeline_mode<synchronous>, transform_indices = @transform_14, window_bounds = array<i64: 256, 64>}, {pipeline_mode = #tpu.pipeline_mode<synchronous>, transform_indices = @transform_15, window_bounds = array<i64: 64, 256>}, {pipeline_mode = #tpu.pipeline_mode<synchronous>, transform_indices = @transform_16, window_bounds = array<i64: 32, 32>}, {pipeline_mode = #tpu.pipeline_mode<synchronous>, transform_indices = @transform_17, window_bounds = array<i64: 32, 1>}, {pipeline_mode = #tpu.pipeline_mode<synchronous>, transform_indices = @transform_18, window_bounds = array<i64: 32, 4>}, {pipeline_mode = #tpu.pipeline_mode<synchronous>, transform_indices = @transform_19, window_bounds = array<i64: 1, 4>}, {pipeline_mode = #tpu.pipeline_mode<synchronous>, transform_indices = @transform_20, window_bounds = array<i64: 32, 4>}, {pipeline_mode = #tpu.pipeline_mode<synchronous>, transform_indices = @transform_21, window_bounds = array<i64: 32, 1>}, {pipeline_mode = #tpu.pipeline_mode<synchronous>, transform_indices = @transform_22, window_bounds = array<i64: 256, 25>}, {pipeline_mode = #tpu.pipeline_mode<synchronous>, transform_indices = @transform_23, window_bounds = array<i64: 25, 256>}, {pipeline_mode = #tpu.pipeline_mode<synchronous>, transform_indices = @transform_24, window_bounds = array<i64: 32, 32>}, {pipeline_mode = #tpu.pipeline_mode<synchronous>, transform_indices = @transform_25, window_bounds = array<i64: 32, 1>}, {pipeline_mode = #tpu.pipeline_mode<synchronous>, transform_indices = @transform_26, window_bounds = array<i64: 32, 4>}, {pipeline_mode = #tpu.pipeline_mode<synchronous>, transform_indices = @transform_27, window_bounds = array<i64: 1, 4>}, {pipeline_mode = #tpu.pipeline_mode<synchronous>, transform_indices = @transform_28, window_bounds = array<i64: 32, 4>}, {pipeline_mode = #tpu.pipeline_mode<synchronous>, transform_indices = @transform_29, window_bounds = array<i64: 32, 1>}, {pipeline_mode = #tpu.pipeline_mode<synchronous>, transform_indices = @transform_30, window_bounds = array<i64: 256, 4>}, {pipeline_mode = #tpu.pipeline_mode<synchronous>, transform_indices = @transform_31, window_bounds = array<i64: 4, 256>}, {transform_indices = @transform_32, window_bounds = array<i64: 1, 32, 256>}]} {
    %c0 = arith.constant 0 : index
    %c0_0 = arith.constant 0 : index
    %c0_1 = arith.constant 0 : index
    %0 = vector.load %arg1[%c0, %c0_0, %c0_1] : memref<1x32x256xf32, #tpu.memory_space<vmem>>, vector<1x32x256xf32>
    %1 = vector.shape_cast %0 : vector<1x32x256xf32> to vector<32x256xf32>
    %2 = arith.truncf %1 : vector<32x256xf32> to vector<32x256xbf16>
    %c0_2 = arith.constant 0 : index
    %c0_3 = arith.constant 0 : index
    %3 = vector.load %arg34[%c0_2, %c0_3] : memref<160x256xbf16, #tpu.memory_space<vmem>>, vector<32x256xbf16>
    tpu.vector_store %arg34[%c0_2, %c0_3], %2 {strides = array<i32>} : memref<160x256xbf16, #tpu.memory_space<vmem>>, vector<32x256xbf16>,
    %c0_4 = arith.constant 0 : index
    %c0_5 = arith.constant 0 : index
    %4 = vector.load %arg3[%c0_4, %c0_5] : memref<32x32xbf16, #tpu.memory_space<vmem>>, vector<32x32xbf16>
    %5 = arith.truncf %1 : vector<32x256xf32> to vector<32x256xbf16>
    %cst = arith.constant dense<0.000000e+00> : vector<32x256xf32>
    %6 = tpu.matmul %4, %5, %cst {dimension_numbers = #tpu.dot_dimension_numbers<[1], [0], [0], [1], [0, 0, 1, 1], [], []>} : vector<32x32xbf16>, vector<32x256xbf16>, vector<32x256xf32> -> vector<32x256xf32>
    %c0_6 = arith.constant 0 : index
    %c0_7 = arith.constant 0 : index
    %7 = vector.load %arg4[%c0_6, %c0_7] : memref<32x1xf32, #tpu.memory_space<vmem>>, vector<32x1xf32>
    %8 = vector.broadcast %7 : vector<32x1xf32> to vector<32x256xf32>
    %9 = arith.addf %6, %8 : vector<32x256xf32>
    %cst_8 = arith.constant dense<0.000000e+00> : vector<32xf32>
    %10 = vector.multi_reduction <add>, %9, %cst_8 [1] : vector<32x256xf32> to vector<32xf32>
    %11 = vector.shape_cast %10 : vector<32xf32> to vector<32x1xf32>
    %cst_9 = arith.constant 3.906250e-03 : f32
    %12 = vector.broadcast %cst_9 : f32 to vector<32x1xf32>
    %13 = arith.mulf %11, %12 : vector<32x1xf32>
    %c0_10 = arith.constant 0 : index
    %c0_11 = arith.constant 0 : index
    %14 = vector.load %arg5[%c0_10, %c0_11] : memref<32x4xf32, #tpu.memory_space<vmem>>, vector<32x4xf32>
    %15 = vector.broadcast %13 : vector<32x1xf32> to vector<32x4xf32>
    %16 = arith.mulf %14, %15 : vector<32x4xf32>
    %cst_12 = arith.constant dense<0.000000e+00> : vector<4xf32>
    %17 = vector.multi_reduction <add>, %16, %cst_12 [0] : vector<32x4xf32> to vector<4xf32>
    %18 = vector.shape_cast %17 : vector<4xf32> to vector<1x4xf32>
    %c0_13 = arith.constant 0 : index
    %c0_14 = arith.constant 0 : index
    %19 = vector.load %arg6[%c0_13, %c0_14] : memref<1x4xf32, #tpu.memory_space<vmem>>, vector<1x4xf32>
    %20 = arith.addf %18, %19 : vector<1x4xf32>
    %cst_15 = arith.constant 0.000000e+00 : f32
    %21 = vector.broadcast %cst_15 : f32 to vector<1x4xf32>
    %22 = arith.maximumf %20, %21 : vector<1x4xf32>
    %c0_16 = arith.constant 0 : index
    %c0_17 = arith.constant 0 : index
    %23 = vector.load %arg7[%c0_16, %c0_17] : memref<32x4xf32, #tpu.memory_space<vmem>>, vector<32x4xf32>
    %24 = vector.broadcast %22 : vector<1x4xf32> to vector<32x4xf32>
    %25 = arith.mulf %23, %24 : vector<32x4xf32>
    %cst_18 = arith.constant dense<0.000000e+00> : vector<32xf32>
    %26 = vector.multi_reduction <add>, %25, %cst_18 [1] : vector<32x4xf32> to vector<32xf32>
    %27 = vector.shape_cast %26 : vector<32xf32> to vector<32x1xf32>
    %c0_19 = arith.constant 0 : index
    %c0_20 = arith.constant 0 : index
    %28 = vector.load %arg8[%c0_19, %c0_20] : memref<32x1xf32, #tpu.memory_space<vmem>>, vector<32x1xf32>
    %29 = arith.addf %27, %28 : vector<32x1xf32>
    %30 = arith.negf %29 : vector<32x1xf32>
    %31 = math.exp %30 : vector<32x1xf32>
    %cst_21 = arith.constant 1.000000e+00 : f32
    %32 = vector.broadcast %cst_21 : f32 to vector<32x1xf32>
    %33 = arith.addf %32, %31 : vector<32x1xf32>
    %34 = arith.divf %32, %33 : vector<32x1xf32>
    %35 = vector.broadcast %34 : vector<32x1xf32> to vector<32x256xf32>
    %36 = arith.mulf %9, %35 : vector<32x256xf32>
    %37 = arith.truncf %36 : vector<32x256xf32> to vector<32x256xbf16>
    %c32 = arith.constant 32 : index
    %c0_22 = arith.constant 0 : index
    %38 = vector.load %arg34[%c32, %c0_22] : memref<160x256xbf16, #tpu.memory_space<vmem>>, vector<32x256xbf16>
    tpu.vector_store %arg34[%c32, %c0_22], %37 {strides = array<i32>} : memref<160x256xbf16, #tpu.memory_space<vmem>>, vector<32x256xbf16>,
    %39 = arith.truncf %1 : vector<32x256xf32> to vector<32x256xbf16>
    %c0_23 = arith.constant 0 : index
    %c0_24 = arith.constant 0 : index
    %40 = vector.load %arg15[%c0_23, %c0_24] : memref<256x64xbf16, #tpu.memory_space<vmem>>, vector<256x64xbf16>
    %cst_25 = arith.constant dense<0.000000e+00> : vector<32x64xf32>
    %41 = tpu.matmul %39, %40, %cst_25 {dimension_numbers = #tpu.dot_dimension_numbers<[1], [0], [0], [1], [0, 0, 1, 1], [], []>} : vector<32x256xbf16>, vector<256x64xbf16>, vector<32x64xf32> -> vector<32x64xf32>
    %c0_26 = arith.constant 0 : index
    %c0_27 = arith.constant 0 : index
    %42 = vector.load %arg9[%c0_26, %c0_27] : memref<32x32xbf16, #tpu.memory_space<vmem>>, vector<32x32xbf16>
    %43 = arith.truncf %41 : vector<32x64xf32> to vector<32x64xbf16>
    %cst_28 = arith.constant dense<0.000000e+00> : vector<32x64xf32>
    %44 = tpu.matmul %42, %43, %cst_28 {dimension_numbers = #tpu.dot_dimension_numbers<[1], [0], [0], [1], [0, 0, 1, 1], [], []>} : vector<32x32xbf16>, vector<32x64xbf16>, vector<32x64xf32> -> vector<32x64xf32>
    %c0_29 = arith.constant 0 : index
    %c0_30 = arith.constant 0 : index
    %45 = vector.load %arg10[%c0_29, %c0_30] : memref<32x1xf32, #tpu.memory_space<vmem>>, vector<32x1xf32>
    %46 = vector.broadcast %45 : vector<32x1xf32> to vector<32x64xf32>
    %47 = arith.addf %44, %46 : vector<32x64xf32>
    %cst_31 = arith.constant dense<0.000000e+00> : vector<32xf32>
    %48 = vector.multi_reduction <add>, %47, %cst_31 [1] : vector<32x64xf32> to vector<32xf32>
    %49 = vector.shape_cast %48 : vector<32xf32> to vector<32x1xf32>
    %cst_32 = arith.constant 1.562500e-02 : f32
    %50 = vector.broadcast %cst_32 : f32 to vector<32x1xf32>
    %51 = arith.mulf %49, %50 : vector<32x1xf32>
    %c0_33 = arith.constant 0 : index
    %c0_34 = arith.constant 0 : index
    %52 = vector.load %arg11[%c0_33, %c0_34] : memref<32x4xf32, #tpu.memory_space<vmem>>, vector<32x4xf32>
    %53 = vector.broadcast %51 : vector<32x1xf32> to vector<32x4xf32>
    %54 = arith.mulf %52, %53 : vector<32x4xf32>
    %cst_35 = arith.constant dense<0.000000e+00> : vector<4xf32>
    %55 = vector.multi_reduction <add>, %54, %cst_35 [0] : vector<32x4xf32> to vector<4xf32>
    %56 = vector.shape_cast %55 : vector<4xf32> to vector<1x4xf32>
    %c0_36 = arith.constant 0 : index
    %c0_37 = arith.constant 0 : index
    %57 = vector.load %arg12[%c0_36, %c0_37] : memref<1x4xf32, #tpu.memory_space<vmem>>, vector<1x4xf32>
    %58 = arith.addf %56, %57 : vector<1x4xf32>
    %cst_38 = arith.constant 0.000000e+00 : f32
    %59 = vector.broadcast %cst_38 : f32 to vector<1x4xf32>
    %60 = arith.maximumf %58, %59 : vector<1x4xf32>
    %c0_39 = arith.constant 0 : index
    %c0_40 = arith.constant 0 : index
    %61 = vector.load %arg13[%c0_39, %c0_40] : memref<32x4xf32, #tpu.memory_space<vmem>>, vector<32x4xf32>
    %62 = vector.broadcast %60 : vector<1x4xf32> to vector<32x4xf32>
    %63 = arith.mulf %61, %62 : vector<32x4xf32>
    %cst_41 = arith.constant dense<0.000000e+00> : vector<32xf32>
    %64 = vector.multi_reduction <add>, %63, %cst_41 [1] : vector<32x4xf32> to vector<32xf32>
    %65 = vector.shape_cast %64 : vector<32xf32> to vector<32x1xf32>
    %c0_42 = arith.constant 0 : index
    %c0_43 = arith.constant 0 : index
    %66 = vector.load %arg14[%c0_42, %c0_43] : memref<32x1xf32, #tpu.memory_space<vmem>>, vector<32x1xf32>
    %67 = arith.addf %65, %66 : vector<32x1xf32>
    %68 = arith.negf %67 : vector<32x1xf32>
    %69 = math.exp %68 : vector<32x1xf32>
    %cst_44 = arith.constant 1.000000e+00 : f32
    %70 = vector.broadcast %cst_44 : f32 to vector<32x1xf32>
    %71 = arith.addf %70, %69 : vector<32x1xf32>
    %72 = arith.divf %70, %71 : vector<32x1xf32>
    %73 = vector.broadcast %72 : vector<32x1xf32> to vector<32x64xf32>
    %74 = arith.mulf %47, %73 : vector<32x64xf32>
    %75 = arith.truncf %74 : vector<32x64xf32> to vector<32x64xbf16>
    %c0_45 = arith.constant 0 : index
    %c0_46 = arith.constant 0 : index
    %76 = vector.load %arg16[%c0_45, %c0_46] : memref<64x256xbf16, #tpu.memory_space<vmem>>, vector<64x256xbf16>
    %cst_47 = arith.constant dense<0.000000e+00> : vector<32x256xf32>
    %77 = tpu.matmul %75, %76, %cst_47 {dimension_numbers = #tpu.dot_dimension_numbers<[1], [0], [0], [1], [0, 0, 1, 1], [], []>} : vector<32x64xbf16>, vector<64x256xbf16>, vector<32x256xf32> -> vector<32x256xf32>
    %78 = arith.truncf %77 : vector<32x256xf32> to vector<32x256xbf16>
    %c64 = arith.constant 64 : index
    %c0_48 = arith.constant 0 : index
    %79 = vector.load %arg34[%c64, %c0_48] : memref<160x256xbf16, #tpu.memory_space<vmem>>, vector<32x256xbf16>
    tpu.vector_store %arg34[%c64, %c0_48], %78 {strides = array<i32>} : memref<160x256xbf16, #tpu.memory_space<vmem>>, vector<32x256xbf16>,
    %80 = arith.truncf %1 : vector<32x256xf32> to vector<32x256xbf16>
    %c0_49 = arith.constant 0 : index
    %c0_50 = arith.constant 0 : index
    %81 = vector.load %arg23[%c0_49, %c0_50] : memref<256x25xbf16, #tpu.memory_space<vmem>>, vector<256x25xbf16>
    %cst_51 = arith.constant dense<0.000000e+00> : vector<32x25xf32>
    %82 = tpu.matmul %80, %81, %cst_51 {dimension_numbers = #tpu.dot_dimension_numbers<[1], [0], [0], [1], [0, 0, 1, 1], [], []>} : vector<32x256xbf16>, vector<256x25xbf16>, vector<32x25xf32> -> vector<32x25xf32>
    %c0_52 = arith.constant 0 : index
    %c0_53 = arith.constant 0 : index
    %83 = vector.load %arg17[%c0_52, %c0_53] : memref<32x32xbf16, #tpu.memory_space<vmem>>, vector<32x32xbf16>
    %84 = arith.truncf %82 : vector<32x25xf32> to vector<32x25xbf16>
    %cst_54 = arith.constant dense<0.000000e+00> : vector<32x25xf32>
    %85 = tpu.matmul %83, %84, %cst_54 {dimension_numbers = #tpu.dot_dimension_numbers<[1], [0], [0], [1], [0, 0, 1, 1], [], []>} : vector<32x32xbf16>, vector<32x25xbf16>, vector<32x25xf32> -> vector<32x25xf32>
    %c0_55 = arith.constant 0 : index
    %c0_56 = arith.constant 0 : index
    %86 = vector.load %arg18[%c0_55, %c0_56] : memref<32x1xf32, #tpu.memory_space<vmem>>, vector<32x1xf32>
    %87 = vector.broadcast %86 : vector<32x1xf32> to vector<32x25xf32>
    %88 = arith.addf %85, %87 : vector<32x25xf32>
    %cst_57 = arith.constant dense<0.000000e+00> : vector<32xf32>
    %89 = vector.multi_reduction <add>, %88, %cst_57 [1] : vector<32x25xf32> to vector<32xf32>
    %90 = vector.shape_cast %89 : vector<32xf32> to vector<32x1xf32>
    %cst_58 = arith.constant 4.000000e-02 : f32
    %91 = vector.broadcast %cst_58 : f32 to vector<32x1xf32>
    %92 = arith.mulf %90, %91 : vector<32x1xf32>
    %c0_59 = arith.constant 0 : index
    %c0_60 = arith.constant 0 : index
    %93 = vector.load %arg19[%c0_59, %c0_60] : memref<32x4xf32, #tpu.memory_space<vmem>>, vector<32x4xf32>
    %94 = vector.broadcast %92 : vector<32x1xf32> to vector<32x4xf32>
    %95 = arith.mulf %93, %94 : vector<32x4xf32>
    %cst_61 = arith.constant dense<0.000000e+00> : vector<4xf32>
    %96 = vector.multi_reduction <add>, %95, %cst_61 [0] : vector<32x4xf32> to vector<4xf32>
    %97 = vector.shape_cast %96 : vector<4xf32> to vector<1x4xf32>
    %c0_62 = arith.constant 0 : index
    %c0_63 = arith.constant 0 : index
    %98 = vector.load %arg20[%c0_62, %c0_63] : memref<1x4xf32, #tpu.memory_space<vmem>>, vector<1x4xf32>
    %99 = arith.addf %97, %98 : vector<1x4xf32>
    %cst_64 = arith.constant 0.000000e+00 : f32
    %100 = vector.broadcast %cst_64 : f32 to vector<1x4xf32>
    %101 = arith.maximumf %99, %100 : vector<1x4xf32>
    %c0_65 = arith.constant 0 : index
    %c0_66 = arith.constant 0 : index
    %102 = vector.load %arg21[%c0_65, %c0_66] : memref<32x4xf32, #tpu.memory_space<vmem>>, vector<32x4xf32>
    %103 = vector.broadcast %101 : vector<1x4xf32> to vector<32x4xf32>
    %104 = arith.mulf %102, %103 : vector<32x4xf32>
    %cst_67 = arith.constant dense<0.000000e+00> : vector<32xf32>
    %105 = vector.multi_reduction <add>, %104, %cst_67 [1] : vector<32x4xf32> to vector<32xf32>
    %106 = vector.shape_cast %105 : vector<32xf32> to vector<32x1xf32>
    %c0_68 = arith.constant 0 : index
    %c0_69 = arith.constant 0 : index
    %107 = vector.load %arg22[%c0_68, %c0_69] : memref<32x1xf32, #tpu.memory_space<vmem>>, vector<32x1xf32>
    %108 = arith.addf %106, %107 : vector<32x1xf32>
    %109 = arith.negf %108 : vector<32x1xf32>
    %110 = math.exp %109 : vector<32x1xf32>
    %cst_70 = arith.constant 1.000000e+00 : f32
    %111 = vector.broadcast %cst_70 : f32 to vector<32x1xf32>
    %112 = arith.addf %111, %110 : vector<32x1xf32>
    %113 = arith.divf %111, %112 : vector<32x1xf32>
    %114 = vector.broadcast %113 : vector<32x1xf32> to vector<32x25xf32>
    %115 = arith.mulf %88, %114 : vector<32x25xf32>
    %116 = arith.truncf %115 : vector<32x25xf32> to vector<32x25xbf16>
    %c0_71 = arith.constant 0 : index
    %c0_72 = arith.constant 0 : index
    %117 = vector.load %arg24[%c0_71, %c0_72] : memref<25x256xbf16, #tpu.memory_space<vmem>>, vector<25x256xbf16>
    %cst_73 = arith.constant dense<0.000000e+00> : vector<32x256xf32>
    %118 = tpu.matmul %116, %117, %cst_73 {dimension_numbers = #tpu.dot_dimension_numbers<[1], [0], [0], [1], [0, 0, 1, 1], [], []>} : vector<32x25xbf16>, vector<25x256xbf16>, vector<32x256xf32> -> vector<32x256xf32>
    %119 = arith.truncf %118 : vector<32x256xf32> to vector<32x256xbf16>
    %c96 = arith.constant 96 : index
    %c0_74 = arith.constant 0 : index
    %120 = vector.load %arg34[%c96, %c0_74] : memref<160x256xbf16, #tpu.memory_space<vmem>>, vector<32x256xbf16>
    tpu.vector_store %arg34[%c96, %c0_74], %119 {strides = array<i32>} : memref<160x256xbf16, #tpu.memory_space<vmem>>, vector<32x256xbf16>,
    %121 = arith.truncf %1 : vector<32x256xf32> to vector<32x256xbf16>
    %c0_75 = arith.constant 0 : index
    %c0_76 = arith.constant 0 : index
    %122 = vector.load %arg31[%c0_75, %c0_76] : memref<256x4xbf16, #tpu.memory_space<vmem>>, vector<256x4xbf16>
    %cst_77 = arith.constant dense<0.000000e+00> : vector<32x4xf32>
    %123 = tpu.matmul %121, %122, %cst_77 {dimension_numbers = #tpu.dot_dimension_numbers<[1], [0], [0], [1], [0, 0, 1, 1], [], []>} : vector<32x256xbf16>, vector<256x4xbf16>, vector<32x4xf32> -> vector<32x4xf32>
    %c0_78 = arith.constant 0 : index
    %c0_79 = arith.constant 0 : index
    %124 = vector.load %arg25[%c0_78, %c0_79] : memref<32x32xbf16, #tpu.memory_space<vmem>>, vector<32x32xbf16>
    %125 = arith.truncf %123 : vector<32x4xf32> to vector<32x4xbf16>
    %cst_80 = arith.constant dense<0.000000e+00> : vector<32x4xf32>
    %126 = tpu.matmul %124, %125, %cst_80 {dimension_numbers = #tpu.dot_dimension_numbers<[1], [0], [0], [1], [0, 0, 1, 1], [], []>} : vector<32x32xbf16>, vector<32x4xbf16>, vector<32x4xf32> -> vector<32x4xf32>
    %c0_81 = arith.constant 0 : index
    %c0_82 = arith.constant 0 : index
    %127 = vector.load %arg26[%c0_81, %c0_82] : memref<32x1xf32, #tpu.memory_space<vmem>>, vector<32x1xf32>
    %128 = vector.broadcast %127 : vector<32x1xf32> to vector<32x4xf32>
    %129 = arith.addf %126, %128 : vector<32x4xf32>
    %cst_83 = arith.constant dense<0.000000e+00> : vector<32xf32>
    %130 = vector.multi_reduction <add>, %129, %cst_83 [1] : vector<32x4xf32> to vector<32xf32>
    %131 = vector.shape_cast %130 : vector<32xf32> to vector<32x1xf32>
    %cst_84 = arith.constant 2.500000e-01 : f32
    %132 = vector.broadcast %cst_84 : f32 to vector<32x1xf32>
    %133 = arith.mulf %131, %132 : vector<32x1xf32>
    %c0_85 = arith.constant 0 : index
    %c0_86 = arith.constant 0 : index
    %134 = vector.load %arg27[%c0_85, %c0_86] : memref<32x4xf32, #tpu.memory_space<vmem>>, vector<32x4xf32>
    %135 = vector.broadcast %133 : vector<32x1xf32> to vector<32x4xf32>
    %136 = arith.mulf %134, %135 : vector<32x4xf32>
    %cst_87 = arith.constant dense<0.000000e+00> : vector<4xf32>
    %137 = vector.multi_reduction <add>, %136, %cst_87 [0] : vector<32x4xf32> to vector<4xf32>
    %138 = vector.shape_cast %137 : vector<4xf32> to vector<1x4xf32>
    %c0_88 = arith.constant 0 : index
    %c0_89 = arith.constant 0 : index
    %139 = vector.load %arg28[%c0_88, %c0_89] : memref<1x4xf32, #tpu.memory_space<vmem>>, vector<1x4xf32>
    %140 = arith.addf %138, %139 : vector<1x4xf32>
    %cst_90 = arith.constant 0.000000e+00 : f32
    %141 = vector.broadcast %cst_90 : f32 to vector<1x4xf32>
    %142 = arith.maximumf %140, %141 : vector<1x4xf32>
    %c0_91 = arith.constant 0 : index
    %c0_92 = arith.constant 0 : index
    %143 = vector.load %arg29[%c0_91, %c0_92] : memref<32x4xf32, #tpu.memory_space<vmem>>, vector<32x4xf32>
    %144 = vector.broadcast %142 : vector<1x4xf32> to vector<32x4xf32>
    %145 = arith.mulf %143, %144 : vector<32x4xf32>
    %cst_93 = arith.constant dense<0.000000e+00> : vector<32xf32>
    %146 = vector.multi_reduction <add>, %145, %cst_93 [1] : vector<32x4xf32> to vector<32xf32>
    %147 = vector.shape_cast %146 : vector<32xf32> to vector<32x1xf32>
    %c0_94 = arith.constant 0 : index
    %c0_95 = arith.constant 0 : index
    %148 = vector.load %arg30[%c0_94, %c0_95] : memref<32x1xf32, #tpu.memory_space<vmem>>, vector<32x1xf32>
    %149 = arith.addf %147, %148 : vector<32x1xf32>
    %150 = arith.negf %149 : vector<32x1xf32>
    %151 = math.exp %150 : vector<32x1xf32>
    %cst_96 = arith.constant 1.000000e+00 : f32
    %152 = vector.broadcast %cst_96 : f32 to vector<32x1xf32>
    %153 = arith.addf %152, %151 : vector<32x1xf32>
    %154 = arith.divf %152, %153 : vector<32x1xf32>
    %155 = vector.broadcast %154 : vector<32x1xf32> to vector<32x4xf32>
    %156 = arith.mulf %129, %155 : vector<32x4xf32>
    %157 = arith.truncf %156 : vector<32x4xf32> to vector<32x4xbf16>
    %c0_97 = arith.constant 0 : index
    %c0_98 = arith.constant 0 : index
    %158 = vector.load %arg32[%c0_97, %c0_98] : memref<4x256xbf16, #tpu.memory_space<vmem>>, vector<4x256xbf16>
    %cst_99 = arith.constant dense<0.000000e+00> : vector<32x256xf32>
    %159 = tpu.matmul %157, %158, %cst_99 {dimension_numbers = #tpu.dot_dimension_numbers<[1], [0], [0], [1], [0, 0, 1, 1], [], []>} : vector<32x4xbf16>, vector<4x256xbf16>, vector<32x256xf32> -> vector<32x256xf32>
    %160 = arith.truncf %159 : vector<32x256xf32> to vector<32x256xbf16>
    %c128 = arith.constant 128 : index
    %c0_100 = arith.constant 0 : index
    %161 = vector.load %arg34[%c128, %c0_100] : memref<160x256xbf16, #tpu.memory_space<vmem>>, vector<32x256xbf16>
    tpu.vector_store %arg34[%c128, %c0_100], %160 {strides = array<i32>} : memref<160x256xbf16, #tpu.memory_space<vmem>>, vector<32x256xbf16>,
    %c0_101 = arith.constant 0 : index
    %c0_102 = arith.constant 0 : index
    %162 = vector.load %arg2[%c0_101, %c0_102] : memref<32x160xbf16, #tpu.memory_space<vmem>>, vector<32x160xbf16>
    %c0_103 = arith.constant 0 : index
    %c0_104 = arith.constant 0 : index
    %163 = vector.load %arg34[%c0_103, %c0_104] : memref<160x256xbf16, #tpu.memory_space<vmem>>, vector<160x256xbf16>
    %cst_105 = arith.constant dense<0.000000e+00> : vector<32x256xf32>
    %164 = tpu.matmul %162, %163, %cst_105 {dimension_numbers = #tpu.dot_dimension_numbers<[1], [0], [0], [1], [0, 0, 1, 1], [], []>} : vector<32x160xbf16>, vector<160x256xbf16>, vector<32x256xf32> -> vector<32x256xf32>
    %c0_106 = arith.constant 0 : index
    %c0_107 = arith.constant 0 : index
    %c0_108 = arith.constant 0 : index
    %165 = vector.load %arg33[%c0_106, %c0_107, %c0_108] : memref<1x32x256xf32, #tpu.memory_space<vmem>>, vector<1x32x256xf32>
    %166 = vector.shape_cast %165 : vector<1x32x256xf32> to vector<32x256xf32>
    %167 = vector.shape_cast %164 : vector<32x256xf32> to vector<1x32x256xf32>
    tpu.vector_store %arg33[%c0_106, %c0_107, %c0_108], %167 {strides = array<i32>} : memref<1x32x256xf32, #tpu.memory_space<vmem>>, vector<1x32x256xf32>,
    return
  }
  func.func @transform_0(%arg0: i32) -> (i32, i32, i32) {
    %c0_i32 = arith.constant 0 : i32
    %c0_i32_0 = arith.constant 0 : i32
    %c0_i32_1 = arith.constant 0 : i32
    return %arg0, %c0_i32, %c0_i32_0 : i32, i32, i32
  }
  func.func @transform_1(%arg0: i32) -> (i32, i32) {
    %c0_i32 = arith.constant 0 : i32
    %c0_i32_0 = arith.constant 0 : i32
    %c0_i32_1 = arith.constant 0 : i32
    return %c0_i32, %c0_i32_0 : i32, i32
  }
  func.func @transform_2(%arg0: i32) -> (i32, i32) {
    %c0_i32 = arith.constant 0 : i32
    %c0_i32_0 = arith.constant 0 : i32
    %c0_i32_1 = arith.constant 0 : i32
    return %c0_i32, %c0_i32_0 : i32, i32
  }
  func.func @transform_3(%arg0: i32) -> (i32, i32) {
    %c0_i32 = arith.constant 0 : i32
    %c0_i32_0 = arith.constant 0 : i32
    %c0_i32_1 = arith.constant 0 : i32
    return %c0_i32, %c0_i32_0 : i32, i32
  }
  func.func @transform_4(%arg0: i32) -> (i32, i32) {
    %c0_i32 = arith.constant 0 : i32
    %c0_i32_0 = arith.constant 0 : i32
    %c0_i32_1 = arith.constant 0 : i32
    return %c0_i32, %c0_i32_0 : i32, i32
  }
  func.func @transform_5(%arg0: i32) -> (i32, i32) {
    %c0_i32 = arith.constant 0 : i32
    %c0_i32_0 = arith.constant 0 : i32
    %c0_i32_1 = arith.constant 0 : i32
    return %c0_i32, %c0_i32_0 : i32, i32
  }
  func.func @transform_6(%arg0: i32) -> (i32, i32) {
    %c0_i32 = arith.constant 0 : i32
    %c0_i32_0 = arith.constant 0 : i32
    %c0_i32_1 = arith.constant 0 : i32
    return %c0_i32, %c0_i32_0 : i32, i32
  }
  func.func @transform_7(%arg0: i32) -> (i32, i32) {
    %c0_i32 = arith.constant 0 : i32
    %c0_i32_0 = arith.constant 0 : i32
    %c0_i32_1 = arith.constant 0 : i32
    return %c0_i32, %c0_i32_0 : i32, i32
  }
  func.func @transform_8(%arg0: i32) -> (i32, i32) {
    %c0_i32 = arith.constant 0 : i32
    %c0_i32_0 = arith.constant 0 : i32
    %c0_i32_1 = arith.constant 0 : i32
    return %c0_i32, %c0_i32_0 : i32, i32
  }
  func.func @transform_9(%arg0: i32) -> (i32, i32) {
    %c0_i32 = arith.constant 0 : i32
    %c0_i32_0 = arith.constant 0 : i32
    %c0_i32_1 = arith.constant 0 : i32
    return %c0_i32, %c0_i32_0 : i32, i32
  }
  func.func @transform_10(%arg0: i32) -> (i32, i32) {
    %c0_i32 = arith.constant 0 : i32
    %c0_i32_0 = arith.constant 0 : i32
    %c0_i32_1 = arith.constant 0 : i32
    return %c0_i32, %c0_i32_0 : i32, i32
  }
  func.func @transform_11(%arg0: i32) -> (i32, i32) {
    %c0_i32 = arith.constant 0 : i32
    %c0_i32_0 = arith.constant 0 : i32
    %c0_i32_1 = arith.constant 0 : i32
    return %c0_i32, %c0_i32_0 : i32, i32
  }
  func.func @transform_12(%arg0: i32) -> (i32, i32) {
    %c0_i32 = arith.constant 0 : i32
    %c0_i32_0 = arith.constant 0 : i32
    %c0_i32_1 = arith.constant 0 : i32
    return %c0_i32, %c0_i32_0 : i32, i32
  }
  func.func @transform_13(%arg0: i32) -> (i32, i32) {
    %c0_i32 = arith.constant 0 : i32
    %c0_i32_0 = arith.constant 0 : i32
    %c0_i32_1 = arith.constant 0 : i32
    return %c0_i32, %c0_i32_0 : i32, i32
  }
  func.func @transform_14(%arg0: i32) -> (i32, i32) {
    %c0_i32 = arith.constant 0 : i32
    %c0_i32_0 = arith.constant 0 : i32
    %c0_i32_1 = arith.constant 0 : i32
    return %c0_i32, %c0_i32_0 : i32, i32
  }
  func.func @transform_15(%arg0: i32) -> (i32, i32) {
    %c0_i32 = arith.constant 0 : i32
    %c0_i32_0 = arith.constant 0 : i32
    %c0_i32_1 = arith.constant 0 : i32
    return %c0_i32, %c0_i32_0 : i32, i32
  }
  func.func @transform_16(%arg0: i32) -> (i32, i32) {
    %c0_i32 = arith.constant 0 : i32
    %c0_i32_0 = arith.constant 0 : i32
    %c0_i32_1 = arith.constant 0 : i32
    return %c0_i32, %c0_i32_0 : i32, i32
  }
  func.func @transform_17(%arg0: i32) -> (i32, i32) {
    %c0_i32 = arith.constant 0 : i32
    %c0_i32_0 = arith.constant 0 : i32
    %c0_i32_1 = arith.constant 0 : i32
    return %c0_i32, %c0_i32_0 : i32, i32
  }
  func.func @transform_18(%arg0: i32) -> (i32, i32) {
    %c0_i32 = arith.constant 0 : i32
    %c0_i32_0 = arith.constant 0 : i32
    %c0_i32_1 = arith.constant 0 : i32
    return %c0_i32, %c0_i32_0 : i32, i32
  }
  func.func @transform_19(%arg0: i32) -> (i32, i32) {
    %c0_i32 = arith.constant 0 : i32
    %c0_i32_0 = arith.constant 0 : i32
    %c0_i32_1 = arith.constant 0 : i32
    return %c0_i32, %c0_i32_0 : i32, i32
  }
  func.func @transform_20(%arg0: i32) -> (i32, i32) {
    %c0_i32 = arith.constant 0 : i32
    %c0_i32_0 = arith.constant 0 : i32
    %c0_i32_1 = arith.constant 0 : i32
    return %c0_i32, %c0_i32_0 : i32, i32
  }
  func.func @transform_21(%arg0: i32) -> (i32, i32) {
    %c0_i32 = arith.constant 0 : i32
    %c0_i32_0 = arith.constant 0 : i32
    %c0_i32_1 = arith.constant 0 : i32
    return %c0_i32, %c0_i32_0 : i32, i32
  }
  func.func @transform_22(%arg0: i32) -> (i32, i32) {
    %c0_i32 = arith.constant 0 : i32
    %c0_i32_0 = arith.constant 0 : i32
    %c0_i32_1 = arith.constant 0 : i32
    return %c0_i32, %c0_i32_0 : i32, i32
  }
  func.func @transform_23(%arg0: i32) -> (i32, i32) {
    %c0_i32 = arith.constant 0 : i32
    %c0_i32_0 = arith.constant 0 : i32
    %c0_i32_1 = arith.constant 0 : i32
    return %c0_i32, %c0_i32_0 : i32, i32
  }
  func.func @transform_24(%arg0: i32) -> (i32, i32) {
    %c0_i32 = arith.constant 0 : i32
    %c0_i32_0 = arith.constant 0 : i32
    %c0_i32_1 = arith.constant 0 : i32
    return %c0_i32, %c0_i32_0 : i32, i32
  }
  func.func @transform_25(%arg0: i32) -> (i32, i32) {
    %c0_i32 = arith.constant 0 : i32
    %c0_i32_0 = arith.constant 0 : i32
    %c0_i32_1 = arith.constant 0 : i32
    return %c0_i32, %c0_i32_0 : i32, i32
  }
  func.func @transform_26(%arg0: i32) -> (i32, i32) {
    %c0_i32 = arith.constant 0 : i32
    %c0_i32_0 = arith.constant 0 : i32
    %c0_i32_1 = arith.constant 0 : i32
    return %c0_i32, %c0_i32_0 : i32, i32
  }
  func.func @transform_27(%arg0: i32) -> (i32, i32) {
    %c0_i32 = arith.constant 0 : i32
    %c0_i32_0 = arith.constant 0 : i32
    %c0_i32_1 = arith.constant 0 : i32
    return %c0_i32, %c0_i32_0 : i32, i32
  }
  func.func @transform_28(%arg0: i32) -> (i32, i32) {
    %c0_i32 = arith.constant 0 : i32
    %c0_i32_0 = arith.constant 0 : i32
    %c0_i32_1 = arith.constant 0 : i32
    return %c0_i32, %c0_i32_0 : i32, i32
  }
  func.func @transform_29(%arg0: i32) -> (i32, i32) {
    %c0_i32 = arith.constant 0 : i32
    %c0_i32_0 = arith.constant 0 : i32
    %c0_i32_1 = arith.constant 0 : i32
    return %c0_i32, %c0_i32_0 : i32, i32
  }
  func.func @transform_30(%arg0: i32) -> (i32, i32) {
    %c0_i32 = arith.constant 0 : i32
    %c0_i32_0 = arith.constant 0 : i32
    %c0_i32_1 = arith.constant 0 : i32
    return %c0_i32, %c0_i32_0 : i32, i32
  }
  func.func @transform_31(%arg0: i32) -> (i32, i32) {
    %c0_i32 = arith.constant 0 : i32
    %c0_i32_0 = arith.constant 0 : i32
    %c0_i32_1 = arith.constant 0 : i32
    return %c0_i32, %c0_i32_0 : i32, i32
  }
  func.func @transform_32(%arg0: i32) -> (i32, i32, i32) {
    %c0_i32 = arith.constant 0 : i32
    %c0_i32_0 = arith.constant 0 : i32
    %c0_i32_1 = arith.constant 0 : i32
    return %arg0, %c0_i32, %c0_i32_0 : i32, i32, i32
  }
}

</mosaic_0001>

<bundles_post_ra>
// kernel: tpu_custom_call.1
= control target key start
LH: loop header
LB: loop body
LE: loop exit
PB: predicated region body
PF: predicated region fallthrough
CT: control target
= control target key end

     0   :  { %s3473_s6 = smov 1   ;;  %s3474_s10 = smov 2   ;;  %s4196_s0 = inlined_call_operand.smem [shape: u32[33], index: -1, kind: input, shape index: {}] }
   0x1   :  { %s3518_s5 = sld [smem:[%s4196_s0]]   ;;  %s3475_s14 = smov 3  }
   0x2   :  { %s3523_s9 = sld [smem:[%s4196_s0 + %s3473_s6]]   ;;  %s3476_s18 = smov 4  }
   0x3   :  { %s3528_s13 = sld [smem:[%s4196_s0 + %s3474_s10]]   ;;  %s3477_s22 = smov 5  }
   0x4   :  { %s3533_s17 = sld [smem:[%s4196_s0 + %s3475_s14]]   ;;  %s3478_s26 = smov 6  }
   0x5   :  { %s3538_s21 = sld [smem:[%s4196_s0 + %s3476_s18]]   ;;  %s3479_s30 = smov 7  }
   0x6   :  { %s3543_s25 = sld [smem:[%s4196_s0 + %s3477_s22]]   ;;  %s3480_s4 = smov 8  }
   0x7   :  { %4225 = sst [smem:[#allocation6_spill]] %s3518_s5  ;;  %s3481_s10 = smov 9  }
   0x8   :  { %4226 = sst [smem:[#allocation7_spill]] %s3523_s9  ;;  %s3482_s15 = smov 10  }
   0x9   :  { %4227 = sst [smem:[#allocation8_spill]] %s3528_s13  ;;  %s3483_s20 = smov 11  }
   0xa   :  { %4228 = sst [smem:[#allocation9_spill]] %s3533_s17  ;;  %s3485_s1 = smov 13  }
   0xb   :  { %4229 = sst [smem:[#allocation10_spill]] %s3538_s21  ;;  %s3486_s7 = smov 14  }
   0xc   :  { %4230 = sst [smem:[#allocation11_spill]] %s3543_s25  ;;  %s3488_s22 = smov 16  }
   0xd   :  { %s3548_s29 = sld [smem:[%s4196_s0 + %s3478_s26]]   ;;  %s3484_s26 = smov 12  }
   0xe   :  { %s3553_s3 = sld [smem:[%s4196_s0 + %s3479_s30]]   ;;  %s3489_s28 = smov 17  }
   0xf   :  { %s3558_s8 = sld [smem:[%s4196_s0 + %s3480_s4]]  }
  0x10   :  { %s3563_s14 = sld [smem:[%s4196_s0 + %s3481_s10]]  }
  0x11   :  { %s3568_s19 = sld [smem:[%s4196_s0 + %s3482_s15]]   ;;  %s3487_s15 = smov 15  }
  0x12   :  { %s3573_s24 = sld [smem:[%s4196_s0 + %s3483_s20]]  }
  0x13   :  { %4231 = sst [smem:[#allocation12_spill]] %s3548_s29 }
  0x14   :  { %4232 = sst [smem:[#allocation13_spill]] %s3553_s3 }
  0x15   :  { %4233 = sst [smem:[#allocation14_spill]] %s3558_s8 }
  0x16   :  { %s3578_s30 = sld [smem:[%s4196_s0 + %s3484_s26]]  }
  0x17   :  { %s3583_s6 = sld [smem:[%s4196_s0 + %s3485_s1]]  }
  0x18   :  { %s3588_s12 = sld [smem:[%s4196_s0 + %s3486_s7]]   ;;  %s3490_s7 = smov 18  }
  0x19   :  { %s3593_s20 = sld [smem:[%s4196_s0 + %s3487_s15]]   ;;  %s3491_s15 = smov 19  }
  0x1a   :  { %s3598_s27 = sld [smem:[%s4196_s0 + %s3488_s22]]   ;;  %s3492_s22 = smov 20  }
  0x1b   :  { %s3603_s4 = sld [smem:[%s4196_s0 + %s3489_s28]]   ;;  %s3493_s28 = smov 21  }
  0x1c   :  { %s3608_s9 = sld [smem:[%s4196_s0 + %s3490_s7]]   ;;  %s3494_s7 = smov 22  }
  0x1d   :  { %4234 = sst [smem:[#allocation15_spill]] %s3583_s6 }
  0x1e   :  { %4235 = sst [smem:[#allocation16_spill]] %s3588_s12 }
  0x1f   :  { %s3613_s3 = sld [smem:[%s4196_s0 + %s3491_s15]]   ;;  %s3495_s15 = smov 23  }
  0x20   :  { %s3618_s29 = sld [smem:[%s4196_s0 + %s3492_s22]]   ;;  %s3496_s22 = smov 24  }
  0x21   :  { %4236 = sst [smem:[#allocation17_spill]] %s3603_s4 }
  0x22   :  { %4237 = sst [smem:[#allocation18_spill]] %s3608_s9 }
  0x23   :  { %s3623_s25 = sld [smem:[%s4196_s0 + %s3493_s28]]   ;;  %s3497_s28 = smov 25  }
  0x24   :  { %s3628_s21 = sld [smem:[%s4196_s0 + %s3494_s7]]   ;;  %s3498_s7 = smov 26  }
  0x25   :  { %4238 = sst [smem:[#allocation19_spill]] %s3613_s3 }
  0x26   :  { %4239 = sst [smem:[#allocation20_spill]] %s3618_s29 }
  0x27   :  { %s3633_s17 = sld [smem:[%s4196_s0 + %s3495_s15]]   ;;  %s3499_s15 = smov 27  }
  0x28   :  { %s3638_s29 = sld [smem:[%s4196_s0 + %s3496_s22]]   ;;  %s3500_s22 = smov 28  }
  0x29   :  { %4240 = sst [smem:[#allocation21_spill]] %s3623_s25 }
  0x2a   :  { %s3643_s25 = sld [smem:[%s4196_s0 + %s3497_s28]]   ;;  %s3501_s28 = smov 29  }
  0x2b   :  { %s3648_s3 = sld [smem:[%s4196_s0 + %s3498_s7]]   ;;  %s3502_s7 = smov 30  }
  0x2d   :  { %4241 = sst [smem:[#allocation22_spill]] %s3633_s17 }
  0x2e   :  { %4242 = sst [smem:[#allocation23_spill]] %s3638_s29 }
  0x2f   :  { %s3653_s17 = sld [smem:[%s4196_s0 + %s3499_s15]]   ;;  %s3503_s15 = smov 31  }
  0x30   :  { %4243 = sst [smem:[#allocation24_spill]] %s3643_s25 }
  0x31   :  { %4244 = sst [smem:[#allocation25_spill]] %s3648_s3 }
  0x32   :  { %s3658_s29 = sld [smem:[%s4196_s0 + %s3500_s22]]   ;;  %s3504_s22 = smov 32  }
  0x33   :  { %s3663_s25 = sld [smem:[%s4196_s0 + %s3501_s28]]  }
  0x34   :  { %s3668_s3 = sld [smem:[%s4196_s0 + %s3502_s7]]  }
  0x35   :  { %4245 = sst [smem:[#allocation26_spill]] %s3653_s17 }
  0x36   :  { %s3673_s17 = sld [smem:[%s4196_s0 + %s3503_s15]]  }
  0x38   :  { %4246 = sst [smem:[#allocation27_spill]] %s3658_s29 }
  0x39   :  { %s3678_s29 = sld [smem:[%s4196_s0 + %s3504_s22]]  }
  0x3a   :  { %4247 = sst [smem:[#allocation28_spill]] %s3668_s3 }
  0x3b   :  { %70 = vsyncpa [#allocation4], 0 }
  0x3c   :  { %72 = vsyncpa [#allocation4 + $0x1], 0  ;;  %s3680_s28 = smov 0   ;;  %s3682_s1 = smov 0  }
  0x3d   :  { %s3684_s2 = smov 0   ;;  %s3686_s7 = smov 0  }
  0x3e LB: > { %s4248_s13 = sld [smem:[#allocation8_spill]]  ;;  %s4250_s9 = sld [smem:[#allocation18_spill]]  ;;  %s3467_s2 = sphi %s3684_s2, %s4275_s2   ;;  %s3463_s1 = sphi %s3682_s1, %s4274_s1   ;;  %s3459_s28 = sphi %s3680_s28, %s4273_s28   ;;  %s3471_s7 = sphi %s3686_s7, %s4276_s7  }
  0x3f   : > { %s4249_s12 = sld [smem:[#allocation16_spill]]  ;;  %s4251_s8 = sld [smem:[#allocation14_spill]] }
  0x40   : > { %s4252_s6 = sld [smem:[#allocation15_spill]]  ;;  %s4253_s3 = sld [smem:[#allocation28_spill]] }
  0x41   : > { %s4254_s4 = sld [smem:[#allocation17_spill]]  ;;  %s3701_s0 = sadd.s32 4294967295, %s3471_s7  }
  0x42   : > { %s2932_s10 = sadd.s32 4294967294, %s3471_s7   ;;  %s3705_s11 = sadd.s32 1, %s3471_s7  }
  0x43   : > { %s762_s15 = sadd.s32 1, %s3467_s2  ;;  %s759_s16 = ssub.s32 %s3471_s7, %s3705_s11 }
  0x44   : > { %p772_p0 = scmp.ne.s32.totalorder %s3467_s2, %s3463_s1  ;;  %p760_p1 = scmp.eq.s32.totalorder %s759_s16, 0 }
  0x45   : > { %p773_p2 = scmp.eq.s32.totalorder %s3701_s0, 1  ;;  %p778_p3 = scmp.ne.s32.totalorder %s3463_s1, %s3459_s28 }
  0x46   : > { %p779_p4 = scmp.eq.s32.totalorder %s2932_s10, 1  ;;  %p2935_p7 = scmp.ge.s32.totalorder %s3471_s7, 1 }
  0x47   : > { %s3716_s18 = scalar_select %p760_p1, %s3467_s2, %s762_s15  }
  0x48   : > { %p3718_p5 = por %p773_p2, %p772_p0  ;;  %p3722_p6 = por %p779_p4, %p778_p3 }
  0x49   : > { %p898_p8 = scmp.lt.s32.totalorder %s3471_s7, 3 }
  0x4b   : > { %p899_p9 = pnand %p2935_p7, %p898_p8 }
  0x4c   : > { %v3265_v0 = vld [vmem:[%s4249_s12 + $0x40] sm:$0xff] (!%p899_p9)   ;;  %v3267_v2 = vld [vmem:[%s4249_s12 + $0x48] sm:$0xff] (!%p899_p9)   ;;  %s4257_s5 = sld [smem:[#allocation6_spill]] (!%p899_p9)  ;;  %p980_p10 = scmp.lt.s32.totalorder (!%p899_p9), %s3701_s0, 1  ;;  %v3269_v4 = vld [vmem:[%s4249_s12 + $0x50] sm:$0xff] (!%p899_p9)   ;;  %v3505_v29 = vmov (!%p899_p9), 0  }
  0x4d   : > { %902 = sbr.rel (%p899_p9) target bundleno = 3558 (0xde6), region = 148  ;;  %v3266_v1 = vld [vmem:[%s4249_s12] sm:$0xff] (!%p899_p9)   ;;  %3052 = vmatprep.subr.bf16.mxu1 (!%p899_p9), %v3265_v0  ;;  %v3268_v3 = vld [vmem:[%s4249_s12 + $0x8] sm:$0xff] (!%p899_p9)   ;;  %v3270_v5 = vld [vmem:[%s4249_s12 + $0x10] sm:$0xff] (!%p899_p9)   ;;  %1079 = vmatprep.mubr.bf16.mxu0 (!%p899_p9), %v3505_v29  ;;  %vm1040_vm0 = vcmask (!%p899_p9), 261120   ;;  %vm1505_vm1 = vcmask (!%p899_p9), 523264  }
  0x4e   : > { %3053 = vmatpush3.bf16.msra.mxu1 (!%p899_p9), %v3266_v1  ;;  %v3271_v6 = vld [vmem:[%s4249_s12 + $0x58] sm:$0xff] (!%p899_p9)   ;;  %v3273_v8 = vld [vmem:[%s4249_s12 + $0x60] sm:$0xff] (!%p899_p9)   ;;  %v3275_v10 = vld [vmem:[%s4249_s12 + $0x68] sm:$0xff] (!%p899_p9)   ;;  %3263 = vset.pattern.permute.xlu0 (!%p899_p9), %v3505_v29  ;;  %vm1124_vm2 = vcmask (!%p899_p9), 31744   ;;  %vm2015_vm3 = vcmask (!%p899_p9), 203776   ;;  %s4258_s16 = sld [smem:[#allocation19_spill]] (!%p899_p9) }
  0x4f   : > { %3054 = vmatprep.subr.bf16.mxu1 (!%p899_p9), %v3267_v2  ;;  %v3272_v7 = vld [vmem:[%s4249_s12 + $0x18] sm:$0xff] (!%p899_p9)   ;;  %v3274_v9 = vld [vmem:[%s4249_s12 + $0x20] sm:$0xff] (!%p899_p9)   ;;  %v3276_v14 = vld [vmem:[%s4249_s12 + $0x28] sm:$0xff] (!%p899_p9)   ;;  %3264 = vset.pattern.permute.xlu1 (!%p899_p9), %v3505_v29  ;;  %vm2166_vm4 = vcmask (!%p899_p9), 1043456   ;;  %vm2167_vm5 = vcmask (!%p899_p9), 1044480   ;;  %vm2647_vm6 = vcmask (!%p899_p9), 1041408  }
  0x50   : > { %v3277_v19 = vld [vmem:[%s4249_s12 + $0x70] sm:$0xff] (!%p899_p9)   ;;  %v3279_v25 = vld [vmem:[%s4249_s12 + $0x78] sm:$0xff] (!%p899_p9)   ;;  %v3281_v28 = vld [vmem:[%s4248_s13] sm:$0xff] (!%p899_p9)  }
  0x51   : > { %v3278_v24 = vld [vmem:[%s4249_s12 + $0x30] sm:$0xff] (!%p899_p9)   ;;  %v3280_v27 = vld [vmem:[%s4249_s12 + $0x38] sm:$0xff] (!%p899_p9)   ;;  %v3282_v30 = vld [vmem:[%s4248_s13 + $0x8] sm:$0xff] (!%p899_p9)  }
  0x52   : > { %3055 = vmatpush3.bf16.msra.mxu1 (!%p899_p9), %v3268_v3  ;;  %v3283_v31 = vld [vmem:[%s4251_s8] sm:$0xff] (!%p899_p9)   ;;  %v1418_v33 = vld [vmem:[%s3563_s14 + $0x10] sm:$0xff] (!%p899_p9)  ;;  %v1417_v34 = vld [vmem:[%s3563_s14 + $0x8] sm:$0xff] (!%p899_p9) }
  0x53   : > { %3056 = vmatprep.subr.bf16.mxu1 (!%p899_p9), %v3269_v4  ;;  %v1416_v32 = vld [vmem:[%s3563_s14] sm:$0xff] (!%p899_p9)  ;;  %1432 = vperm.xlu1 (!%p899_p9), %3264, %v1418_v33   ;;  %v1419_v35 = vld [vmem:[%s3563_s14 + $0x18] sm:$0xff] (!%p899_p9)  ;;  %v3284_v50 = vld [vmem:[%s4251_s8 + $0x8] sm:$0xff] (!%p899_p9)  }
  0x54   : > { %s981_s26 = scalar_select %p980_p10, %s3701_s0, 1  ;;  %1422 = vperm.xlu0 %3263, %v1416_v32  }
  0x56   : > { %s3050_s10 = sshll.u32 %s981_s26, 6  ;;  %3057 = vmatpush3.bf16.msra.mxu1 %v3270_v5  ;;  %s4259_s26 = sld [smem:[#allocation20_spill]] }
  0x57   : > { %3058 = vmatprep.subr.bf16.mxu1 %v3271_v6  ;;  %s984_s15 = scalar_lea.vmem %s4257_s5, %s3050_s10  ;;  %1437 = vperm.xlu1 %3264, %v1419_v35   ;;  %s4260_s10 = sld [smem:[#allocation22_spill]] }
  0x58   : > { %v987_v11 = vld [vmem:[%s984_s15 + $0x8] sm:$0xff]  ;;  %v989_v12 = vld [vmem:[%s984_s15 + $0x18] sm:$0xff]  ;;  %v986_v13 = vld [vmem:[%s984_s15] sm:$0xff]  ;;  %1427 = vperm.xlu0 %3263, %v1417_v34   ;;  %s4265_s5 = sld [smem:[#allocation25_spill]] }
  0x59   : > { %v3743_v15 = vpack.c.bf16 %v989_v12, %v987_v11  ;;  %v988_v16 = vld [vmem:[%s984_s15 + $0x10] sm:$0xff]  ;;  %v991_v17 = vld [vmem:[%s984_s15 + $0x28] sm:$0xff]  ;;  %v993_v18 = vld [vmem:[%s984_s15 + $0x38] sm:$0xff] }
  0x5a   : > { %3059 = vmatpush3.bf16.msra.mxu1 %v3272_v7  ;;  %v990_v20 = vld [vmem:[%s984_s15 + $0x20] sm:$0xff]  ;;  %v992_v21 = vld [vmem:[%s984_s15 + $0x30] sm:$0xff]  ;;  %v3747_v22 = vpack.c.bf16 %v988_v16, %v986_v13  ;;  %v3749_v23 = vpack.c.bf16 %v993_v18, %v991_v17  ;;  %s4261_s15 = sld [smem:[#allocation21_spill]] }
  0x5b   : > { %3060 = vmatprep.subr.bf16.mxu1 %v3273_v8  ;;  %1393 = vmatprep.mubr.bf16.mxu1 %v3743_v15  ;;  %v3756_v26 = vpack.c.bf16 %v992_v21, %v990_v20  ;;  %v1522_v11 = vld [vmem:[%s3568_s19] sm:$0xff] }
  0x5c   : > { %1047 = vmatprep.subr.bf16.mxu0 %v3743_v15 }
  0x5d   : > { %1048 = vmatpush1.bf16.msra.mxu0 %v3747_v22 }
  0x5e   : > { %3061 = vmatpush3.bf16.msra.mxu1 %v3274_v9  ;;  %1049 = vmatprep.subr.bf16.mxu0 %v3749_v23 }
  0x5f   : > { %3062 = vmatprep.subr.bf16.mxu1 %v3275_v10 }
  0x61   : > { %1050 = vmatpush1.bf16.msra.mxu0 %v3756_v26 }
  0x62   : > { %3063 = vmatpush3.bf16.msra.mxu1 %v3276_v14  ;;  %v1523_v14 = vld [vmem:[%s3568_s19 + $0x8] sm:$0xff] }
  0x63   : > { %3064 = vmatprep.subr.bf16.mxu1 %v3277_v19  ;;  %v1524_v19 = vld [vmem:[%s3568_s19 + $0x10] sm:$0xff] }
  0x64   : > { %2941 = vmatmul.mubr.msk.bf16.vlgmr.msra.gmra.mrb[0].mxu0 %vm1040_vm0, %v3281_v28 }
  0x65   : > { %1089 = vmatprep.mubr.bf16.mxu0 %v3505_v29 }
  0x66   : > { %3065 = vmatpush3.bf16.msra.mxu1 %v3278_v24 }
  0x67   : > { %3066 = vmatprep.subr.bf16.mxu1 %v3279_v25 }
  0x6a   : > { %3067 = vmatpush3.bf16.msra.mxu1 %v3280_v27 }
  0x6c   : > { %2942 = vmatmul.mubr.msk.bf16.gmra.mrb[4].mxu0 %vm1040_vm0, %v3282_v30 }
  0x6d   : > { %1394 = vmatmul.mubr.bf16.vlgmr.msra.gmra.mrb[0].mxu1 %v3747_v22  ;;  %3152 = vmatprep.mubr.msk.bf16.mxu0 %vm1040_vm0, %v3283_v31  ;;  %v1525_v31 = vld [vmem:[%s3568_s19 + $0x18] sm:$0xff] }
  0x6e   : > { %1401 = vmatprep.mubr.bf16.mxu1 %v3749_v23 }
  0x75   : > { %1402 = vmatmul.mubr.bf16.gmra.mrb[4].mxu1 %v3756_v26 }
  0x76   : > { %1911 = vmatprep.mubr.bf16.mxu1 %v3749_v23 }
  0xd2   : > { %v1433_v60 = vpop.permute.xlu1 %1432 }
  0xd3   : > { %v1423_v59 = vpop.permute.xlu0 %1422 }
  0xd6   : > { %v1438_v6 = vpop.permute.xlu1 %1437 }
  0xd7   : > { %v1428_v1 = vpop.permute.xlu0 %1427 }
 0x137   : > { %v3781_v51 = vpop.f32.mrb[0].mxu0 }
 0x138   : > { %v3783_v52 = vpop.f32.mrb[1].mxu0 }
 0x139   : > { %v3785_v53 = vpop.f32.mrb[2].mxu0 }
 0x13a   : > { %v3787_v54 = vpop.f32.mrb[3].mxu0 }
 0x13f   : > { %v3789_v55 = vpop.f32.mrb[4].mxu0 }
 0x140   : > { %v3068_v36 = vpop.f32.mrb[0].mxu1  ;;  %v3791_v56 = vpop.f32.mrb[5].mxu0 }
 0x141   : > { %v3069_v37 = vpop.f32.mrb[1].mxu1  ;;  %v3793_v57 = vpop.f32.mrb[6].mxu0 }
 0x142   : > { %v3070_v38 = vadd.f32 %v3069_v37, %v3068_v36  ;;  %v3071_v39 = vpop.f32.mrb[2].mxu1  ;;  %v3795_v58 = vpop.f32.mrb[7].mxu0 }
 0x143   : > { %v3072_v40 = vpop.f32.mrb[3].mxu1 }
 0x144   : > { %v3073_v41 = vadd.f32 %v3072_v40, %v3071_v39 }
 0x146   : > { %v1414_v42 = vpack.c.bf16 %v3073_v41, %v3070_v38 }
 0x148   : > { %v3074_v43 = vpop.f32.mrb[4].mxu1  ;;  %3148 = vmatprep.subr.bf16.mxu0 %v1414_v42 }
 0x149   : > { %v3075_v44 = vpop.f32.mrb[5].mxu1  ;;  %3149 = vmatpush3.bf16.msra.mxu0 %v1414_v42  ;;  %v1145_v42 = vlaneseq }
 0x14a   : > { %v3076_v45 = vadd.f32 %v3075_v44, %v3074_v43  ;;  %v3077_v46 = vpop.f32.mrb[6].mxu1 }
 0x14b   : > { %v3078_v47 = vpop.f32.mrb[7].mxu1 }
 0x14c   : > { %v3079_v48 = vadd.f32 %v3078_v47, %v3077_v46  ;;  %v1543_v46 = vld [vmem:[%s3573_s24] sm:$0x1] }
 0x14e   : > { %v1415_v49 = vpack.c.bf16 %v3079_v48, %v3076_v45  ;;  %v1146_v45 = vshrl.u32 %v1145_v42, 7 }
 0x150   : > { %3150 = vmatprep.subr.bf16.mxu0 %v1415_v49  ;;  %v3822_v48 = vsub.s32 0, %v1146_v45 }
 0x151   : > { %3151 = vmatpush3.bf16.msra.mxu0 %v1415_v49 }
 0x154   : > { %3153 = vmatmul.mubr.msk.bf16.vlgmr.msra.gmra.mrb[8].mxu0 %vm1040_vm0, %v3284_v50 }
 0x155   : > { %1714 = vmatprep.mubr.bf16.mxu0 %v3505_v29 }
 0x227   : > { %v3154_v61 = vpop.f32.mrb[8].mxu0 }
 0x228   : > { %v1490_v62 = vpop.f32.mrb[9].mxu0  ;;  %v3799_v3 = vadd.f32 %v3154_v61, %v1433_v60  ;;  %v1546_v60 = vld [vmem:[%s3578_s30] sm:$0xff] }
 0x229   : > { %v3797_v63 = vadd.f32 %v1490_v62, %v1423_v59  ;;  %v3155_v0 = vpop.f32.mrb[10].mxu0  ;;  %v1547_v59 = vld [vmem:[%s3578_s30 + $0x8] sm:$0xff]  ;;  %v1549_v62 = vld [vmem:[%s3578_s30 + $0x18] sm:$0xff] }
 0x22a   : > { %v1493_v2 = vpop.f32.mrb[11].mxu0  ;;  %v3807_v8 = vadd.f32 %v3155_v0, %v1438_v6  ;;  %v1512_v9 = vsel %vm1505_vm1, %v3799_v3, 0.0  ;;  %v1548_v0 = vld [vmem:[%s3578_s30 + $0x10] sm:$0xff] }
 0x22b   : > { %v3801_v4 = vadd.f32 %v1493_v2, %v1428_v1  ;;  %v1506_v5 = vsel %vm1505_vm1, %v3797_v63, 0.0 }
 0x22c   : > { %1507 = vadd.xlane.f32.xlu0 %v1506_v5  ;;  %v1515_v10 = vsel %vm1505_vm1, %v3807_v8, 0.0 }
 0x22d   : > { %v1509_v7 = vsel %vm1505_vm1, %v3801_v4, 0.0 }
 0x22e   : > { %1510 = vadd.xlane.f32.xlu1 %v1509_v7 }
 0x230   : > { %1513 = vadd.xlane.f32.xlu0 %v1512_v9 }
 0x234   : > { %1516 = vadd.xlane.f32.xlu0 %v1515_v10 }
 0x2b9   : > { %v1508_v12 = vpop.xlane.xlu0 %1507 }
 0x2ba   : > { %v1518_v13 = vmul.f32 0.015625, %v1508_v12  ;;  %v3285_v12 = vld [vmem:[%s3593_s20] ss:$8 sps:$4 sm:$0xff]  }
 0x2bb   : > { %v1511_v16 = vpop.xlane.xlu1 %1510 }
 0x2bc   : > { %v1526_v17 = vmul.f32 %v1522_v11, %v1518_v13  ;;  %v1519_v18 = vmul.f32 0.015625, %v1511_v16  ;;  %v3287_v13 = vld [vmem:[%s3593_s20 + $0x4] ss:$8 sps:$4 sm:$0xff]   ;;  %v3288_v16 = vld [vmem:[%s3593_s20 + $0x10] ss:$8 sps:$4 sm:$0xff]  }
 0x2bd   : > { %v1514_v20 = vpop.xlane.xlu0 %1513  ;;  %1682 = vmatprep.subr.bf16.mxu0 %v3287_v13  ;;  %v3304_v13 = vld [vmem:[%s3628_s21 + $0x18] sm:$0xff]  }
 0x2be   : > { %v1527_v21 = vmul.f32 %v1523_v14, %v1519_v18  ;;  %v1520_v24 = vmul.f32 0.015625, %v1514_v20  ;;  %v1530_v25 = vsel %vm1124_vm2, %v1526_v17, 0.0  ;;  %v3290_v14 = vld [vmem:[%s3593_s20 + $0x14] ss:$8 sps:$4 sm:$0xff]   ;;  %1683 = vmatpush1.bf16.msra.mxu0 %v3285_v12  ;;  %v3293_v17 = vld [vmem:[%s3593_s20 + $0x24] ss:$8 sps:$4 sm:$0xff]  }
 0x2bf   : > { %1684 = vmatprep.subr.bf16.mxu0 %v3290_v14  ;;  %v3291_v18 = vld [vmem:[%s3593_s20 + $0x20] ss:$8 sps:$4 sm:$0xff]   ;;  %v3294_v20 = vld [vmem:[%s3593_s20 + $0x30] ss:$8 sps:$4 sm:$0xff]  }
 0x2c0   : > { %v1531_v27 = vsel %vm1124_vm2, %v1527_v21, 0.0  ;;  %v1528_v28 = vmul.f32 %v1524_v19, %v1520_v24  ;;  %v3296_v19 = vld [vmem:[%s3593_s20 + $0x34] ss:$8 sps:$4 sm:$0xff]   ;;  %v1571_v21 = vld [vmem:[%s4252_s6 + $0x8] sm:$0xff]  ;;  %v1570_v24 = vld [vmem:[%s4252_s6] sm:$0xff] }
 0x2c1   : > { %v1532_v30 = vadd.f32 %v1531_v27, %v1530_v25  ;;  %v1517_v32 = vpop.xlane.xlu0 %1516  ;;  %v3303_v12 = vld [vmem:[%s3628_s21 + $0x58] sm:$0xff]   ;;  %v3305_v14 = vld [vmem:[%s3628_s21 + $0x60] sm:$0xff]  }
 0x2c2   : > { %v1533_v33 = vsel %vm1124_vm2, %v1528_v28, 0.0  ;;  %v1521_v34 = vmul.f32 0.015625, %v1517_v32  ;;  %1685 = vmatpush1.bf16.msra.mxu0 %v3288_v16  ;;  %v1572_v32 = vld [vmem:[%s4252_s6 + $0x10] sm:$0xff]  ;;  %v3306_v16 = vld [vmem:[%s3628_s21 + $0x20] sm:$0xff]  }
 0x2c3   : > { %v1534_v36 = vadd.f32 %v1533_v33, %v1532_v30  ;;  %1686 = vmatprep.subr.bf16.mxu0 %v3293_v17  ;;  %v3307_v17 = vld [vmem:[%s3628_s21 + $0x68] sm:$0xff]  }
 0x2c4   : > { %v1529_v35 = vmul.f32 %v1525_v31, %v1521_v34  ;;  %v1573_v31 = vld [vmem:[%s4252_s6 + $0x18] sm:$0xff]  ;;  %s4267_s6 = sld [smem:[#allocation27_spill]] }
 0x2c6   : > { %v1535_v37 = vsel %vm1124_vm2, %v1529_v35, 0.0  ;;  %1687 = vmatpush1.bf16.msra.mxu0 %v3291_v18  ;;  %v3308_v18 = vld [vmem:[%s3628_s21 + $0x28] sm:$0xff]  }
 0x2c7   : > { %v1536_v38 = vadd.f32 %v1535_v37, %v1534_v36  ;;  %1688 = vmatprep.subr.bf16.mxu0 %v3296_v19  ;;  %v3309_v19 = vld [vmem:[%s3628_s21 + $0x70] sm:$0xff]  }
 0x2c9   : > { %v1537_v39 = vrot.slane %v1536_v38, 4 }
 0x2ca   : > { %1689 = vmatpush1.bf16.msra.mxu0 %v3294_v20  ;;  %v3310_v20 = vld [vmem:[%s3628_s21 + $0x30] sm:$0xff]  }
 0x2cb   : > { %v1538_v40 = vadd.f32 %v1537_v39, %v1536_v38 }
 0x2cd   : > { %v1539_v41 = vrot.slane %v1538_v40, 2 }
 0x2cf   : > { %v1540_v43 = vadd.f32 %v1539_v41, %v1538_v40 }
 0x2d1   : > { %v1541_v44 = vrot.slane %v1540_v43, 1 }
 0x2d3   : > { %v1542_v47 = vadd.f32 %v1541_v44, %v1540_v43 }
 0x2d5   : > { %v1544_v49 = vadd.f32 %v1543_v46, %v1542_v47 }
 0x2d7   : > { %v1545_v50 = vmax.f32 %v1544_v49, 0.0 }
 0x2d9   : > { %v1553_v61 = vrot.slane %v1545_v50, %v3822_v48 }
 0x2db   : > { %v1555_v1 = vmul.f32 %v1553_v61, %v1547_v59  ;;  %v1554_v2 = vmul.f32 %v1553_v61, %v1546_v60  ;;  %v1557_v7 = vmul.f32 %v1553_v61, %v1549_v62  ;;  %v1556_v9 = vmul.f32 %v1553_v61, %v1548_v0  ;;  %v1926_v60 = vld [vmem:[%s4254_s4] sm:$0xff] }
 0x2dc   : > { %v3297_v61 = vld [vmem:[%s3628_s21 + $0x40] sm:$0xff]  }
 0x2dd   : > { %v1561_v5 = vsel %vm1124_vm2, %v1555_v1, 0.0  ;;  %v1558_v6 = vsel %vm1124_vm2, %v1554_v2, 0.0  ;;  %v1567_v10 = vsel %vm1124_vm2, %v1557_v7, 0.0  ;;  %v1564_v11 = vsel %vm1124_vm2, %v1556_v9, 0.0  ;;  %v3298_v62 = vld [vmem:[%s3628_s21] sm:$0xff]   ;;  %3084 = vmatprep.subr.bf16.mxu0 %v3297_v61  ;;  %v1928_v1 = vld [vmem:[%s4254_s4 + $0x10] sm:$0xff]  ;;  %3172 = vmatprep.subr.bf16.mxu1 %v3297_v61 }
 0x2de   : > { %1562 = vadd.xlane.f32.xlu0 %v1561_v5  ;;  %1559 = vadd.xlane.f32.xlu1 %v1558_v6  ;;  %v3299_v2 = vld [vmem:[%s3628_s21 + $0x48] sm:$0xff]   ;;  %v3301_v9 = vld [vmem:[%s3628_s21 + $0x50] sm:$0xff]  }
 0x2df   : > { %3180 = vmatpush3.bf16.msra.mxu1 %v3298_v62  ;;  %v3300_v6 = vld [vmem:[%s3628_s21 + $0x8] sm:$0xff]  }
 0x2e0   : > { %3173 = vmatprep.subr.bf16.mxu1 %v3299_v2  ;;  %v1927_v7 = vld [vmem:[%s4254_s4 + $0x8] sm:$0xff] }
 0x2e2   : > { %1568 = vadd.xlane.f32.xlu0 %v1567_v10  ;;  %1565 = vadd.xlane.f32.xlu1 %v1564_v11  ;;  %v3302_v10 = vld [vmem:[%s3628_s21 + $0x10] sm:$0xff]   ;;  %v1929_v11 = vld [vmem:[%s4254_s4 + $0x18] sm:$0xff]  ;;  %s4263_s4 = sld [smem:[#allocation23_spill]] }
 0x2e3   : > { %3181 = vmatpush3.bf16.msra.mxu1 %v3300_v6 }
 0x2e4   : > { %3174 = vmatprep.subr.bf16.mxu1 %v3301_v9 }
 0x2e7   : > { %3182 = vmatpush3.bf16.msra.mxu1 %v3302_v10 }
 0x2e8   : > { %3175 = vmatprep.subr.bf16.mxu1 %v3303_v12 }
 0x2eb   : > { %3183 = vmatpush3.bf16.msra.mxu1 %v3304_v13 }
 0x2ec   : > { %3176 = vmatprep.subr.bf16.mxu1 %v3305_v14 }
 0x2ef   : > { %3184 = vmatpush3.bf16.msra.mxu1 %v3306_v16 }
 0x2f0   : > { %3177 = vmatprep.subr.bf16.mxu1 %v3307_v17 }
 0x2f3   : > { %3185 = vmatpush3.bf16.msra.mxu1 %v3308_v18 }
 0x2f4   : > { %3178 = vmatprep.subr.bf16.mxu1 %v3309_v19 }
 0x2f7   : > { %3186 = vmatpush3.bf16.msra.mxu1 %v3310_v20 }
 0x36b   : > { %v1563_v25 = vpop.xlane.xlu0 %1562  ;;  %v1560_v27 = vpop.xlane.xlu1 %1559 }
 0x36c   : > { %v1575_v28 = vadd.f32 %v1571_v21, %v1563_v25  ;;  %v1574_v30 = vadd.f32 %v1570_v24, %v1560_v27  ;;  %v3311_v21 = vld [vmem:[%s3628_s21 + $0x78] sm:$0xff]  }
 0x36d   : > { %v3312_v24 = vld [vmem:[%s3628_s21 + $0x38] sm:$0xff]   ;;  %3179 = vmatprep.subr.bf16.mxu1 %v3311_v21 }
 0x36e   : > { %v2968_v33 = vmul.f32 -1.442695, %v1575_v28  ;;  %v2967_v34 = vmul.f32 -1.442695, %v1574_v30  ;;  %3187 = vmatpush3.bf16.msra.mxu1 %v3312_v24 }
 0x36f   : > { %v1569_v35 = vpop.xlane.xlu0 %1568  ;;  %v1566_v36 = vpop.xlane.xlu1 %1565 }
 0x370   : > { %3345 = vpow2.f32 %v2968_v33  ;;  %v1577_v37 = vadd.f32 %v1573_v31, %v1569_v35  ;;  %v1576_v38 = vadd.f32 %v1572_v32, %v1566_v36 }
 0x371   : > { %3347 = vpow2.f32 %v2967_v34  ;;  %1912 = vmatmul.mubr.bf16.vlgmr.msra.gmra.mrb[8].mxu1 %v3756_v26 }
 0x372   : > { %v2970_v39 = vmul.f32 -1.442695, %v1577_v37  ;;  %v2969_v40 = vmul.f32 -1.442695, %v1576_v38 }
 0x374   : > { %3349 = vpow2.f32 %v2970_v39 }
 0x375   : > { %3351 = vpow2.f32 %v2969_v40  ;;  %v3313_v40 = vld [vmem:[%s3598_s27] sm:$0xff]  }
 0x37a   : > { %v3346_v41 = vpop.eup %3345 }
 0x37b   : > { %v3348_v42 = vpop.eup %3347  ;;  %v1591_v43 = vadd.f32 1.0, %v3346_v41 }
 0x37c   : > { %v1590_v44 = vadd.f32 1.0, %v3348_v42 }
 0x37d   : > { %3353 = vrcp.f32 %v1591_v43 }
 0x37e   : > { %v3350_v45 = vpop.eup %3349  ;;  %3355 = vrcp.f32 %v1590_v44 }
 0x37f   : > { %v3352_v46 = vpop.eup %3351  ;;  %v1593_v49 = vadd.f32 1.0, %v3350_v45 }
 0x380   : > { %v1592_v47 = vadd.f32 1.0, %v3352_v46 }
 0x382   : > { %3357 = vrcp.f32 %v1592_v47 }
 0x383   : > { %3359 = vrcp.f32 %v1593_v49 }
 0x387   : > { %v3354_v50 = vpop.eup %3353 }
 0x388   : > { %v3356_v59 = vpop.eup %3355  ;;  %1609 = vperm.xlu0 %3263, %v3354_v50  }
 0x389   : > { %1604 = vperm.xlu1 %3264, %v3356_v59  }
 0x38c   : > { %v3358_v0 = vpop.eup %3357  ;;  %1932 = vperm.xlu0 %3263, %v1926_v60  }
 0x38d   : > { %1614 = vperm.xlu1 %3264, %v3358_v0   ;;  %v3360_v5 = vpop.eup %3359 }
 0x390   : > { %1942 = vperm.xlu0 %3263, %v1928_v1  }
 0x391   : > { %1619 = vperm.xlu1 %3264, %v3360_v5  }
 0x395   : > { %1937 = vperm.xlu1 %3264, %v1927_v7  }
 0x399   : > { %1947 = vperm.xlu1 %3264, %v1929_v11  }
 0x407   : > { %v1610_v25 = vpop.permute.xlu0 %1609 }
 0x408   : > { %v1623_v27 = vmul.f32 %v1610_v25, %v3801_v4  ;;  %v1605_v28 = vpop.permute.xlu1 %1604 }
 0x409   : > { %v1622_v30 = vmul.f32 %v1605_v28, %v3797_v63 }
 0x40b   : > { %v1626_v31 = vpack.c.bf16 %v1623_v27, %v1622_v30 }
 0x40c   : > { %v1615_v32 = vpop.permute.xlu1 %1614 }
 0x40d   : > { %2979 = vmatmul.mubr.msk.bf16.vlgmr.msra.gmra.mrb[12].mxu0 %vm1505_vm1, %v1626_v31  ;;  %v1624_v34 = vmul.f32 %v1615_v32, %v3799_v3  ;;  %v2032_v31 = vld [vmem:[%s4250_s9] sm:$0xff] }
 0x40e   : > { %3085 = vmatpush3.bf16.msra.mxu0 %v3298_v62  ;;  %1724 = vmatprep.mubr.bf16.mxu0 %v3505_v29 }
 0x40f   : > { %3086 = vmatprep.subr.bf16.mxu0 %v3299_v2 }
 0x410   : > { %v1620_v33 = vpop.permute.xlu1 %1619 }
 0x411   : > { %v1625_v35 = vmul.f32 %v1620_v33, %v3807_v8 }
 0x412   : > { %3087 = vmatpush3.bf16.msra.mxu0 %v3300_v6 }
 0x413   : > { %v1627_v36 = vpack.c.bf16 %v1625_v35, %v1624_v34  ;;  %3088 = vmatprep.subr.bf16.mxu0 %v3301_v9  ;;  %v3314_v9 = vld [vmem:[%s3598_s27 + $0x8] sm:$0xff]  }
 0x414   : > { %v2033_v34 = vld [vmem:[%s4250_s9 + $0x8] sm:$0xff] }
 0x415   : > { %2980 = vmatmul.mubr.msk.bf16.gmra.mrb[16].mxu0 %vm1505_vm1, %v1627_v36 }
 0x416   : > { %3089 = vmatpush3.bf16.msra.mxu0 %v3302_v10  ;;  %1903 = vmatprep.mubr.bf16.mxu0 %v3743_v15  ;;  %v1933_v10 = vpop.permute.xlu0 %1932 }
 0x417   : > { %3090 = vmatprep.subr.bf16.mxu0 %v3303_v12  ;;  %v1938_v12 = vpop.permute.xlu1 %1937 }
 0x41a   : > { %3091 = vmatpush3.bf16.msra.mxu0 %v3304_v13 }
 0x41b   : > { %3092 = vmatprep.subr.bf16.mxu0 %v3305_v14  ;;  %v1948_v25 = vpop.permute.xlu1 %1947 }
 0x41e   : > { %3093 = vmatpush3.bf16.msra.mxu0 %v3306_v16 }
 0x41f   : > { %3094 = vmatprep.subr.bf16.mxu0 %v3307_v17  ;;  %v1943_v17 = vpop.permute.xlu0 %1942 }
 0x422   : > { %3095 = vmatpush3.bf16.msra.mxu0 %v3308_v18 }
 0x423   : > { %3096 = vmatprep.subr.bf16.mxu0 %v3309_v19 }
 0x426   : > { %3097 = vmatpush3.bf16.msra.mxu0 %v3310_v20 }
 0x427   : > { %3098 = vmatprep.subr.bf16.mxu0 %v3311_v21 }
 0x42a   : > { %3099 = vmatpush3.bf16.msra.mxu0 %v3312_v24 }
 0x42d   : > { %1904 = vmatmul.mubr.bf16.vlgmr.msra.gmra.mrb[20].mxu0 %v3747_v22 }
 0x42e   : > { %3160 = vmatprep.mubr.msk.bf16.mxu0 %vm1040_vm0, %v3313_v40 }
 0x444   : > { %v3106_v63 = vpop.f32.mrb[8].mxu1 }
 0x445   : > { %v3107_v3 = vpop.f32.mrb[9].mxu1 }
 0x446   : > { %v3109_v4 = vpop.f32.mrb[10].mxu1  ;;  %v3108_v37 = vadd.f32 %v3107_v3, %v3106_v63  ;;  %v2034_v3 = vld [vmem:[%s4250_s9 + $0x10] sm:$0xff] }
 0x447   : > { %v3110_v8 = vpop.f32.mrb[11].mxu1 }
 0x448   : > { %v3111_v38 = vadd.f32 %v3110_v8, %v3109_v4 }
 0x44a   : > { %v1925_v39 = vpack.c.bf16 %v3111_v38, %v3108_v37 }
 0x4e0   : > { %v3877_v41 = vpop.f32.mrb[12].mxu0 }
 0x4e1   : > { %v3879_v42 = vpop.f32.mrb[13].mxu0 }
 0x4e2   : > { %v3881_v43 = vpop.f32.mrb[14].mxu0 }
 0x4e3   : > { %v1735_v44 = vpack.c.bf16 %v3881_v43, %v3877_v41  ;;  %v3885_v45 = vpop.f32.mrb[15].mxu0 }
 0x4e4   : > { %v1736_v46 = vpack.c.bf16 %v3885_v45, %v3879_v42 }
 0x4e8   : > { %v3889_v47 = vpop.f32.mrb[16].mxu0 }
 0x4e9   : > { %v3891_v49 = vpop.f32.mrb[17].mxu0 }
 0x4ea   : > { %v3893_v50 = vpop.f32.mrb[18].mxu0 }
 0x4eb   : > { %v1737_v59 = vpack.c.bf16 %v3893_v50, %v3889_v47  ;;  %v3897_v60 = vpop.f32.mrb[19].mxu0 }
 0x4ec   : > { %v1738_v61 = vpack.c.bf16 %v3897_v60, %v3891_v49 }
 0x500   : > { %v3100_v62 = vpop.f32.mrb[20].mxu0 }
 0x501   : > { %v3101_v0 = vpop.f32.mrb[21].mxu0 }
 0x502   : > { %v3102_v1 = vadd.f32 %v3101_v0, %v3100_v62  ;;  %v3103_v2 = vpop.f32.mrb[22].mxu0  ;;  %v2035_v0 = vld [vmem:[%s4250_s9 + $0x18] sm:$0xff]  ;;  %s3051_s9 = sshll.u32 %s3701_s0, 10  ;;  %s3507_s0 = smov [#allocation3]  }
 0x503   : > { %v3104_v5 = vpop.f32.mrb[23].mxu0  ;;  %s3413_s12 = sshll.u32 %s3507_s0, 4  ;;  %s3414_s12 = int_to_ptr.vmem [resolvable:$false] %s3413_s12 }
 0x504   : > { %v3105_v6 = vadd.f32 %v3104_v5, %v3103_v2  ;;  %s3415_s13 = scalar_lea.vmem %s3414_s12, 2048 }
 0x506   : > { %v1924_v7 = vpack.c.bf16 %v3105_v6, %v3102_v1 }
 0x508   : > { %3156 = vmatprep.subr.bf16.mxu0 %v1924_v7 }
 0x509   : > { %3157 = vmatpush3.bf16.msra.mxu0 %v1924_v7 }
 0x50a   : > { %3158 = vmatprep.subr.bf16.mxu0 %v1925_v39 }
 0x50d   : > { %3159 = vmatpush3.bf16.msra.mxu0 %v1925_v39 }
 0x510   : > { %3161 = vmatmul.mubr.msk.bf16.vlgmr.msra.gmra.mrb[24].mxu0 %vm1040_vm0, %v3314_v9 }
 0x511   : > { %2208 = vmatprep.mubr.bf16.mxu0 %v3505_v29 }
 0x5e3   : > { %v3162_v11 = vpop.f32.mrb[24].mxu0 }
 0x5e4   : > { %v2000_v13 = vpop.f32.mrb[25].mxu0  ;;  %v3906_v19 = vadd.f32 %v3162_v11, %v1943_v17 }
 0x5e5   : > { %v3904_v14 = vadd.f32 %v2000_v13, %v1933_v10  ;;  %v3163_v16 = vpop.f32.mrb[26].mxu0 }
 0x5e6   : > { %v2003_v18 = vpop.f32.mrb[27].mxu0  ;;  %v3914_v27 = vadd.f32 %v3163_v16, %v1948_v25  ;;  %v2022_v28 = vsel %vm2015_vm3, %v3906_v19, 0.0 }
 0x5e7   : > { %v3908_v20 = vadd.f32 %v2003_v18, %v1938_v12  ;;  %v2016_v21 = vsel %vm2015_vm3, %v3904_v14, 0.0  ;;  %v2053_v18 = vld [vmem:[%s4258_s16] sm:$0x1]  ;;  %s4262_s16 = sld [smem:[#allocation24_spill]] }
 0x5e8   : > { %2017 = vadd.xlane.f32.xlu0 %v2016_v21  ;;  %v2025_v30 = vsel %vm2015_vm3, %v3914_v27, 0.0 }
 0x5e9   : > { %v2019_v24 = vsel %vm2015_vm3, %v3908_v20, 0.0 }
 0x5ea   : > { %2020 = vadd.xlane.f32.xlu1 %v2019_v24 }
 0x5ec   : > { %2023 = vadd.xlane.f32.xlu0 %v2022_v28  ;;  %v2057_v28 = vld [vmem:[%s4259_s26 + $0x8] sm:$0xff] }
 0x5f0   : > { %2026 = vadd.xlane.f32.xlu0 %v2025_v30  ;;  %v2056_v30 = vld [vmem:[%s4259_s26] sm:$0xff] }
 0x675   : > { %v2018_v32 = vpop.xlane.xlu0 %2017 }
 0x676   : > { %v2028_v33 = vmul.f32 0.04, %v2018_v32  ;;  %v2059_v32 = vld [vmem:[%s4259_s26 + $0x18] sm:$0xff] }
 0x677   : > { %v2021_v35 = vpop.xlane.xlu1 %2020 }
 0x678   : > { %v2036_v36 = vmul.f32 %v2032_v31, %v2028_v33  ;;  %v2029_v63 = vmul.f32 0.04, %v2021_v35  ;;  %v2058_v33 = vld [vmem:[%s4259_s26 + $0x10] sm:$0xff] }
 0x679   : > { %v2024_v4 = vpop.xlane.xlu0 %2023 }
 0x67a   : > { %v2037_v8 = vmul.f32 %v2033_v34, %v2029_v63  ;;  %v2030_v37 = vmul.f32 0.04, %v2024_v4  ;;  %v2040_v38 = vsel %vm1124_vm2, %v2036_v36, 0.0 }
 0x67c   : > { %v2041_v39 = vsel %vm1124_vm2, %v2037_v8, 0.0  ;;  %v2038_v40 = vmul.f32 %v2034_v3, %v2030_v37 }
 0x67d   : > { %v2042_v62 = vadd.f32 %v2041_v39, %v2040_v38  ;;  %v2027_v1 = vpop.xlane.xlu0 %2026  ;;  %v3315_v38 = vld [vmem:[%s4260_s10] ss:$8 sps:$4 sm:$0xff]   ;;  %v3317_v39 = vld [vmem:[%s4260_s10 + $0x4] ss:$8 sps:$4 sm:$0xff]  }
 0x67e   : > { %v2043_v2 = vsel %vm1124_vm2, %v2038_v40, 0.0  ;;  %v2031_v5 = vmul.f32 0.04, %v2027_v1  ;;  %v3318_v40 = vld [vmem:[%s4260_s10 + $0x10] ss:$8 sps:$4 sm:$0x1f]   ;;  %2176 = vmatprep.subr.bf16.mxu0 %v3317_v39 }
 0x67f   : > { %v2044_v7 = vadd.f32 %v2043_v2, %v2042_v62  ;;  %v3320_v62 = vld [vmem:[%s4260_s10 + $0x14] ss:$8 sps:$4 sm:$0x1f]   ;;  %2177 = vmatpush1.bf16.msra.mxu0 %v3315_v38  ;;  %v2420_v39 = vld [vmem:[%s4262_s16] sm:$0xff] }
 0x680   : > { %v2039_v6 = vmul.f32 %v2035_v0, %v2031_v5  ;;  %v3506_v0 = vmov 65535  }
 0x681   : > { %v2168_v1 = vsel %vm2166_vm4, 4294967295, %v3506_v0  ;;  %v2422_v0 = vld [vmem:[%s4262_s16 + $0x10] sm:$0xff] }
 0x682   : > { %v2045_v9 = vsel %vm1124_vm2, %v2039_v6, 0.0  ;;  %v2169_v2 = vsel %vm2167_vm5, %v2168_v1, 0 }
 0x683   : > { %v2046_v10 = vadd.f32 %v2045_v9, %v2044_v7  ;;  %v2171_v5 = vand.u32 %v3318_v40, %v2169_v2  ;;  %v2174_v6 = vand.u32 %v3320_v62, %v2169_v2  ;;  %v2081_v7 = vld [vmem:[%s4261_s15 + $0x8] sm:$0xff]  ;;  %v2080_v9 = vld [vmem:[%s4261_s15] sm:$0xff] }
 0x684   : > { %v3321_v40 = vld [vmem:[%s4253_s3 + $0x40] sm:$0xff]   ;;  %v2421_v2 = vld [vmem:[%s4262_s16 + $0x8] sm:$0xff] }
 0x685   : > { %v2047_v11 = vrot.slane %v2046_v10, 4  ;;  %2178 = vmatprep.subr.bf16.mxu0 %v2174_v6 }
 0x686   : > { %2179 = vmatpush1.bf16.msra.mxu0 %v2171_v5  ;;  %v2423_v5 = vld [vmem:[%s4262_s16 + $0x18] sm:$0xff] }
 0x687   : > { %v2048_v12 = vadd.f32 %v2047_v11, %v2046_v10  ;;  %3116 = vmatprep.subr.bf16.mxu0 %v3321_v40 }
 0x689   : > { %v2049_v13 = vrot.slane %v2048_v12, 2 }
 0x68b   : > { %v2050_v16 = vadd.f32 %v2049_v13, %v2048_v12 }
 0x68d   : > { %v2051_v17 = vrot.slane %v2050_v16, 1 }
 0x68f   : > { %v2052_v21 = vadd.f32 %v2051_v17, %v2050_v16  ;;  %v2083_v16 = vld [vmem:[%s4261_s15 + $0x18] sm:$0xff]  ;;  %v2082_v17 = vld [vmem:[%s4261_s15 + $0x10] sm:$0xff] }
 0x691   : > { %v2054_v24 = vadd.f32 %v2053_v18, %v2052_v21 }
 0x693   : > { %v2055_v25 = vmax.f32 %v2054_v24, 0.0 }
 0x695   : > { %v2063_v31 = vrot.slane %v2055_v25, %v3822_v48 }
 0x697   : > { %v2065_v34 = vmul.f32 %v2063_v31, %v2057_v28  ;;  %v2064_v35 = vmul.f32 %v2063_v31, %v2056_v30  ;;  %v2067_v3 = vmul.f32 %v2063_v31, %v2059_v32  ;;  %v2066_v4 = vmul.f32 %v2063_v31, %v2058_v33 }
 0x699   : > { %v2071_v36 = vsel %vm1124_vm2, %v2065_v34, 0.0  ;;  %v2068_v63 = vsel %vm1124_vm2, %v2064_v35, 0.0  ;;  %v2077_v8 = vsel %vm1124_vm2, %v2067_v3, 0.0  ;;  %v2074_v37 = vsel %vm1124_vm2, %v2066_v4, 0.0 }
 0x69a   : > { %2072 = vadd.xlane.f32.xlu0 %v2071_v36  ;;  %2069 = vadd.xlane.f32.xlu1 %v2068_v63 }
 0x69e   : > { %2078 = vadd.xlane.f32.xlu0 %v2077_v8  ;;  %2075 = vadd.xlane.f32.xlu1 %v2074_v37 }
 0x727   : > { %v2073_v10 = vpop.xlane.xlu0 %2072  ;;  %v2070_v11 = vpop.xlane.xlu1 %2069 }
 0x728   : > { %v2085_v12 = vadd.f32 %v2081_v7, %v2073_v10  ;;  %v2084_v13 = vadd.f32 %v2080_v9, %v2070_v11  ;;  %v3322_v11 = vld [vmem:[%s4253_s3] sm:$0xff]  }
 0x72a   : > { %v3002_v18 = vmul.f32 -1.442695, %v2085_v12  ;;  %v3001_v21 = vmul.f32 -1.442695, %v2084_v13  ;;  %v3323_v13 = vld [vmem:[%s4253_s3 + $0x48] sm:$0xff]  }
 0x72b   : > { %v2079_v24 = vpop.xlane.xlu0 %2078  ;;  %v2076_v25 = vpop.xlane.xlu1 %2075 }
 0x72c   : > { %3361 = vpow2.f32 %v3002_v18  ;;  %v2087_v28 = vadd.f32 %v2083_v16, %v2079_v24  ;;  %v2086_v30 = vadd.f32 %v2082_v17, %v2076_v25  ;;  %v3324_v17 = vld [vmem:[%s4253_s3 + $0x8] sm:$0xff]   ;;  %v3325_v18 = vld [vmem:[%s4253_s3 + $0x50] sm:$0xff]  }
 0x72d   : > { %3363 = vpow2.f32 %v3001_v21  ;;  %v3326_v24 = vld [vmem:[%s4253_s3 + $0x10] sm:$0xff]  }
 0x72e   : > { %v3004_v31 = vmul.f32 -1.442695, %v2087_v28  ;;  %v3003_v32 = vmul.f32 -1.442695, %v2086_v30  ;;  %v3327_v28 = vld [vmem:[%s4253_s3 + $0x58] sm:$0xff]  }
 0x72f   : > { %v3328_v30 = vld [vmem:[%s4253_s3 + $0x18] sm:$0xff]  }
 0x730   : > { %3365 = vpow2.f32 %v3004_v31  ;;  %v3331_v31 = vld [vmem:[%s4253_s3 + $0x68] sm:$0xff]  }
 0x731   : > { %3367 = vpow2.f32 %v3003_v32  ;;  %v3332_v32 = vld [vmem:[%s4253_s3 + $0x28] sm:$0xff]  }
 0x736   : > { %v3362_v33 = vpop.eup %3361 }
 0x737   : > { %v3364_v34 = vpop.eup %3363  ;;  %v2101_v35 = vadd.f32 1.0, %v3362_v33  ;;  %v3333_v33 = vld [vmem:[%s4253_s3 + $0x70] sm:$0xff]  }
 0x738   : > { %v2100_v36 = vadd.f32 1.0, %v3364_v34  ;;  %v3334_v34 = vld [vmem:[%s4253_s3 + $0x30] sm:$0xff]  }
 0x739   : > { %3369 = vrcp.f32 %v2101_v35  ;;  %v3335_v35 = vld [vmem:[%s4253_s3 + $0x78] sm:$0xff]  }
 0x73a   : > { %v3366_v63 = vpop.eup %3365  ;;  %3371 = vrcp.f32 %v2100_v36  ;;  %v3336_v36 = vld [vmem:[%s4253_s3 + $0x38] sm:$0xff]  }
 0x73b   : > { %v3368_v3 = vpop.eup %3367  ;;  %v2103_v8 = vadd.f32 1.0, %v3366_v63  ;;  %v3337_v63 = vld [vmem:[%s4263_s4] sm:$0xff]  }
 0x73c   : > { %v2102_v4 = vadd.f32 1.0, %v3368_v3  ;;  %3168 = vmatprep.mubr.msk.bf16.mxu1 %vm1040_vm0, %v3337_v63 }
 0x73e   : > { %3373 = vrcp.f32 %v2102_v4 }
 0x73f   : > { %3375 = vrcp.f32 %v2103_v8 }
 0x743   : > { %v3370_v37 = vpop.eup %3369 }
 0x744   : > { %v3372_v38 = vpop.eup %3371  ;;  %2119 = vperm.xlu0 %3263, %v3370_v37  }
 0x745   : > { %2114 = vperm.xlu1 %3264, %v3372_v38  }
 0x748   : > { %v3374_v62 = vpop.eup %3373  ;;  %2426 = vperm.xlu0 %3263, %v2420_v39  }
 0x749   : > { %2124 = vperm.xlu1 %3264, %v3374_v62   ;;  %v3376_v1 = vpop.eup %3375 }
 0x74c   : > { %2436 = vperm.xlu0 %3263, %v2422_v0  }
 0x74d   : > { %2129 = vperm.xlu1 %3264, %v3376_v1  }
 0x751   : > { %2431 = vperm.xlu1 %3264, %v2421_v2  }
 0x755   : > { %2441 = vperm.xlu1 %3264, %v2423_v5  }
 0x7c3   : > { %v2120_v6 = vpop.permute.xlu0 %2119 }
 0x7c4   : > { %v2133_v7 = vmul.f32 %v2120_v6, %v3908_v20  ;;  %v2115_v9 = vpop.permute.xlu1 %2114 }
 0x7c5   : > { %v2132_v10 = vmul.f32 %v2115_v9, %v3904_v14 }
 0x7c7   : > { %v2136_v12 = vpack.c.bf16 %v2133_v7, %v2132_v10 }
 0x7c8   : > { %v2125_v16 = vpop.permute.xlu1 %2124 }
 0x7c9   : > { %3009 = vmatmul.mubr.msk.bf16.vlgmr.msra.gmra.mrb[28].mxu0 %vm2015_vm3, %v2136_v12  ;;  %v2134_v21 = vmul.f32 %v2125_v16, %v3906_v19  ;;  %v3329_v19 = vld [vmem:[%s4253_s3 + $0x60] sm:$0xff]  }
 0x7ca   : > { %3117 = vmatpush3.bf16.msra.mxu0 %v3322_v11  ;;  %2218 = vmatprep.mubr.bf16.mxu0 %v3505_v29 }
 0x7cb   : > { %3118 = vmatprep.subr.bf16.mxu0 %v3323_v13 }
 0x7cc   : > { %v2130_v20 = vpop.permute.xlu1 %2129 }
 0x7cd   : > { %v2135_v14 = vmul.f32 %v2130_v20, %v3914_v27  ;;  %v3330_v27 = vld [vmem:[%s4253_s3 + $0x20] sm:$0xff]   ;;  %s4264_s3 = sld [smem:[#allocation9_spill]] }
 0x7ce   : > { %3119 = vmatpush3.bf16.msra.mxu0 %v3324_v17 }
 0x7cf   : > { %v2137_v25 = vpack.c.bf16 %v2135_v14, %v2134_v21  ;;  %3120 = vmatprep.subr.bf16.mxu0 %v3325_v18 }
 0x7d1   : > { %3010 = vmatmul.mubr.msk.bf16.gmra.mrb[32].mxu0 %vm2015_vm3, %v2137_v25  ;;  %v3338_v25 = vld [vmem:[%s4263_s4 + $0x8] sm:$0xff]   ;;  %s4266_s4 = sld [smem:[#allocation26_spill]] }
 0x7d2   : > { %3121 = vmatpush3.bf16.msra.mxu0 %v3326_v24  ;;  %2397 = vmatprep.mubr.bf16.mxu0 %v3743_v15 }
 0x7d3   : > { %3122 = vmatprep.subr.bf16.mxu0 %v3327_v28  ;;  %v2427_v28 = vpop.permute.xlu0 %2426 }
 0x7d6   : > { %3123 = vmatpush3.bf16.msra.mxu0 %v3328_v30 }
 0x7d7   : > { %3124 = vmatprep.subr.bf16.mxu0 %v3329_v19  ;;  %v2432_v19 = vpop.permute.xlu1 %2431 }
 0x7da   : > { %3125 = vmatpush3.bf16.msra.mxu0 %v3330_v27 }
 0x7db   : > { %3126 = vmatprep.subr.bf16.mxu0 %v3331_v31 }
 0x7de   : > { %3127 = vmatpush3.bf16.msra.mxu0 %v3332_v32 }
 0x7df   : > { %3128 = vmatprep.subr.bf16.mxu0 %v3333_v33  ;;  %v2437_v33 = vpop.permute.xlu0 %2436 }
 0x7e2   : > { %3129 = vmatpush3.bf16.msra.mxu0 %v3334_v34 }
 0x7e3   : > { %3130 = vmatprep.subr.bf16.mxu0 %v3335_v35 }
 0x7e6   : > { %3131 = vmatpush3.bf16.msra.mxu0 %v3336_v36 }
 0x7e9   : > { %2398 = vmatmul.mubr.bf16.vlgmr.msra.gmra.mrb[36].mxu0 %v3747_v22 }
 0x7ea   : > { %2405 = vmatprep.mubr.bf16.mxu0 %v3749_v23 }
 0x7f1   : > { %2406 = vmatmul.mubr.bf16.gmra.mrb[40].mxu0 %v3756_v26 }
 0x89c   : > { %v3979_v3 = vpop.f32.mrb[28].mxu0 }
 0x89d   : > { %v3981_v4 = vpop.f32.mrb[29].mxu0 }
 0x89e   : > { %v3983_v8 = vpop.f32.mrb[30].mxu0 }
 0x89f   : > { %v2229_v37 = vpack.c.bf16 %v3983_v8, %v3979_v3  ;;  %v3987_v38 = vpop.f32.mrb[31].mxu0 }
 0x8a0   : > { %v2230_v39 = vpack.c.bf16 %v3987_v38, %v3981_v4 }
 0x8a4   : > { %v3991_v40 = vpop.f32.mrb[32].mxu0 }
 0x8a5   : > { %v3993_v62 = vpop.f32.mrb[33].mxu0 }
 0x8a6   : > { %v3995_v0 = vpop.f32.mrb[34].mxu0 }
 0x8a7   : > { %v2231_v1 = vpack.c.bf16 %v3995_v0, %v3991_v40  ;;  %v3999_v2 = vpop.f32.mrb[35].mxu0 }
 0x8a8   : > { %v2232_v5 = vpack.c.bf16 %v3999_v2, %v3993_v62 }
 0x8bc   : > { %v3132_v6 = vpop.f32.mrb[36].mxu0 }
 0x8bd   : > { %v3133_v7 = vpop.f32.mrb[37].mxu0 }
 0x8be   : > { %v3134_v9 = vadd.f32 %v3133_v7, %v3132_v6  ;;  %v3135_v10 = vpop.f32.mrb[38].mxu0  ;;  %v2442_v7 = vpop.permute.xlu1 %2441 }
 0x8bf   : > { %v3136_v11 = vpop.f32.mrb[39].mxu0 }
 0x8c0   : > { %v3137_v12 = vadd.f32 %v3136_v11, %v3135_v10 }
 0x8c2   : > { %v2418_v13 = vpack.c.bf16 %v3137_v12, %v3134_v9  ;;  %v1006_v12 = vld [vmem:[%s4264_s3] sm:$0xff] }
 0x8c4   : > { %v3138_v16 = vpop.f32.mrb[40].mxu0  ;;  %3164 = vmatprep.subr.bf16.mxu1 %v2418_v13 }
 0x8c5   : > { %v3139_v17 = vpop.f32.mrb[41].mxu0  ;;  %3165 = vmatpush3.bf16.msra.mxu1 %v2418_v13  ;;  %v2525_v13 = vld [vmem:[%s4265_s5] sm:$0xff] }
 0x8c6   : > { %v3140_v18 = vadd.f32 %v3139_v17, %v3138_v16  ;;  %v3141_v20 = vpop.f32.mrb[42].mxu0 }
 0x8c7   : > { %v3142_v21 = vpop.f32.mrb[43].mxu0 }
 0x8c8   : > { %v3143_v14 = vadd.f32 %v3142_v21, %v3141_v20 }
 0x8ca   : > { %v2419_v24 = vpack.c.bf16 %v3143_v14, %v3140_v18  ;;  %v2526_v18 = vld [vmem:[%s4265_s5 + $0x8] sm:$0xff] }
 0x8cc   : > { %3166 = vmatprep.subr.bf16.mxu1 %v2419_v24 }
 0x8cd   : > { %3167 = vmatpush3.bf16.msra.mxu1 %v2419_v24  ;;  %v2527_v24 = vld [vmem:[%s4265_s5 + $0x10] sm:$0xff] }
 0x8d0   : > { %3169 = vmatmul.mubr.msk.bf16.vlgmr.msra.gmra.mrb[12].mxu1 %vm1040_vm0, %v3338_v25 }
 0x8d1   : > { %2686 = vmatprep.mubr.bf16.mxu1 %v3505_v29 }
 0x9a3   : > { %v3170_v30 = vpop.f32.mrb[12].mxu1 }
 0x9a4   : > { %v2494_v27 = vpop.f32.mrb[13].mxu1  ;;  %v4008_v35 = vadd.f32 %v3170_v30, %v2437_v33 }
 0x9a5   : > { %v4006_v31 = vadd.f32 %v2494_v27, %v2427_v28  ;;  %v3171_v32 = vpop.f32.mrb[14].mxu1 }
 0x9a6   : > { %v2497_v34 = vpop.f32.mrb[15].mxu1  ;;  %v4016_v9 = vadd.f32 %v3171_v32, %v2442_v7  ;;  %v2515_v10 = vsel %vm1124_vm2, %v4008_v35, 0.0 }
 0x9a7   : > { %v4010_v36 = vadd.f32 %v2497_v34, %v2432_v19  ;;  %v2509_v63 = vsel %vm1124_vm2, %v4006_v31, 0.0  ;;  %v2528_v34 = vld [vmem:[%s4265_s5 + $0x18] sm:$0xff]  ;;  %s4271_s5 = sld [smem:[#allocation13_spill]] }
 0x9a8   : > { %2510 = vadd.xlane.f32.xlu0 %v2509_v63  ;;  %v2518_v11 = vsel %vm1124_vm2, %v4016_v9, 0.0 }
 0x9a9   : > { %v2512_v6 = vsel %vm1124_vm2, %v4010_v36, 0.0 }
 0x9aa   : > { %2513 = vadd.xlane.f32.xlu1 %v2512_v6 }
 0x9ac   : > { %2516 = vadd.xlane.f32.xlu0 %v2515_v10 }
 0x9b0   : > { %2519 = vadd.xlane.f32.xlu0 %v2518_v11 }
 0x9bb   : > { %1012 = vperm.xlu1 %3264, %v1006_v12  }
 0xa35   : > { %v2511_v16 = vpop.xlane.xlu0 %2510 }
 0xa36   : > { %v2521_v17 = vmul.f32 0.25, %v2511_v16 }
 0xa37   : > { %v2514_v20 = vpop.xlane.xlu1 %2513 }
 0xa38   : > { %v2529_v21 = vmul.f32 %v2525_v13, %v2521_v17  ;;  %v2522_v14 = vmul.f32 0.25, %v2514_v20 }
 0xa39   : > { %v2517_v25 = vpop.xlane.xlu0 %2516 }
 0xa3a   : > { %v2530_v28 = vmul.f32 %v2526_v18, %v2522_v14  ;;  %v2523_v30 = vmul.f32 0.25, %v2517_v25  ;;  %v2533_v19 = vsel %vm1124_vm2, %v2529_v21, 0.0  ;;  %v2546_v14 = vld [vmem:[%s4266_s4] sm:$0x1]  ;;  %s4268_s4 = sld [smem:[#allocation10_spill]] }
 0xa3c   : > { %v2534_v27 = vsel %vm1124_vm2, %v2530_v28, 0.0  ;;  %v2531_v32 = vmul.f32 %v2527_v24, %v2523_v30  ;;  %v2550_v30 = vld [vmem:[%s4267_s6 + $0x8] sm:$0xff] }
 0xa3d   : > { %v2535_v33 = vadd.f32 %v2534_v27, %v2533_v19  ;;  %v2520_v63 = vpop.xlane.xlu0 %2519  ;;  %v2549_v19 = vld [vmem:[%s4267_s6] sm:$0xff] }
 0xa3e   : > { %v2536_v6 = vsel %vm1124_vm2, %v2531_v32, 0.0  ;;  %v2524_v7 = vmul.f32 0.25, %v2520_v63  ;;  %v2552_v32 = vld [vmem:[%s4267_s6 + $0x18] sm:$0xff] }
 0xa3f   : > { %v2537_v11 = vadd.f32 %v2536_v6, %v2535_v33  ;;  %v2551_v33 = vld [vmem:[%s4267_s6 + $0x10] sm:$0xff] }
 0xa40   : > { %v2532_v10 = vmul.f32 %v2528_v34, %v2524_v7 }
 0xa42   : > { %v2538_v12 = vsel %vm1124_vm2, %v2532_v10, 0.0 }
 0xa43   : > { %v2539_v13 = vadd.f32 %v2538_v12, %v2537_v11 }
 0xa45   : > { %v2540_v16 = vrot.slane %v2539_v13, 4 }
 0xa47   : > { %v2541_v17 = vadd.f32 %v2540_v16, %v2539_v13  ;;  %v1008_v16 = vld [vmem:[%s4264_s3 + $0x10] sm:$0xff] }
 0xa49   : > { %v2542_v18 = vrot.slane %v2541_v17, 2 }
 0xa4b   : > { %v2543_v20 = vadd.f32 %v2542_v18, %v2541_v17  ;;  %v1009_v17 = vld [vmem:[%s4264_s3 + $0x18] sm:$0xff]  ;;  %v1007_v18 = vld [vmem:[%s4264_s3 + $0x8] sm:$0xff]  ;;  %s4269_s3 = sld [smem:[#allocation11_spill]] }
 0xa4d   : > { %v2544_v21 = vrot.slane %v2543_v20, 1 }
 0xa4f   : > { %v2545_v24 = vadd.f32 %v2544_v21, %v2543_v20  ;;  %v1013_v20 = vpop.permute.xlu1 %1012 }
 0xa50   : > { %v4045_v21 = vadd.f32 %v3781_v51, %v1013_v20 }
 0xa51   : > { %v2547_v25 = vadd.f32 %v2546_v14, %v2545_v24  ;;  %v4048_v14 = vadd.f32 %v3783_v52, %v1013_v20 }
 0xa53   : > { %v2548_v28 = vmax.f32 %v2547_v25, 0.0  ;;  %v1100_v24 = vadd.f32 %v4048_v14, %v4045_v21  ;;  %v2573_v25 = vld [vmem:[%s3663_s25] sm:$0xff] }
 0xa55   : > { %v2556_v27 = vrot.slane %v2548_v28, %v3822_v48  ;;  %v2574_v28 = vld [vmem:[%s3663_s25 + $0x8] sm:$0xff] }
 0xa57   : > { %v2558_v34 = vmul.f32 %v2556_v27, %v2550_v30  ;;  %v2557_v63 = vmul.f32 %v2556_v27, %v2549_v19  ;;  %v2560_v10 = vmul.f32 %v2556_v27, %v2552_v32  ;;  %v2559_v11 = vmul.f32 %v2556_v27, %v2551_v33  ;;  %v2575_v32 = vld [vmem:[%s3663_s25 + $0x10] sm:$0xff] }
 0xa59   : > { %v2564_v6 = vsel %vm1124_vm2, %v2558_v34, 0.0  ;;  %v2561_v7 = vsel %vm1124_vm2, %v2557_v63, 0.0  ;;  %v2570_v12 = vsel %vm1124_vm2, %v2560_v10, 0.0  ;;  %v2567_v13 = vsel %vm1124_vm2, %v2559_v11, 0.0  ;;  %v2576_v63 = vld [vmem:[%s3663_s25 + $0x18] sm:$0xff] }
 0xa5a   : > { %2565 = vadd.xlane.f32.xlu0 %v2564_v6  ;;  %2562 = vadd.xlane.f32.xlu1 %v2561_v7 }
 0xa5e   : > { %2571 = vadd.xlane.f32.xlu0 %v2570_v12  ;;  %2568 = vadd.xlane.f32.xlu1 %v2567_v13 }
 0xa6f   : > { %1022 = vperm.xlu1 %3264, %v1008_v16  }
 0xa73   : > { %1027 = vperm.xlu1 %3264, %v1009_v17  }
 0xa74   : > { %1017 = vperm.xlu0 %3263, %v1007_v18  }
 0xa93   : > { %1101 = vadd.xlane.f32.xlu0 %v1100_v24 }
 0xae7   : > { %v2566_v30 = vpop.xlane.xlu0 %2565  ;;  %v2563_v19 = vpop.xlane.xlu1 %2562 }
 0xae8   : > { %v2577_v27 = vadd.f32 %v2573_v25, %v2563_v19  ;;  %v2578_v33 = vadd.f32 %v2574_v28, %v2566_v30 }
 0xaea   : > { %v3031_v34 = vmul.f32 -1.442695, %v2577_v27  ;;  %v3032_v52 = vmul.f32 -1.442695, %v2578_v33 }
 0xaeb   : > { %v2572_v6 = vpop.xlane.xlu0 %2571  ;;  %v2569_v7 = vpop.xlane.xlu1 %2568 }
 0xaec   : > { %v2579_v51 = vadd.f32 %v2575_v32, %v2569_v7  ;;  %3377 = vpow2.f32 %v3031_v34  ;;  %v2580_v10 = vadd.f32 %v2576_v63, %v2572_v6  ;;  %v3035_v7 = vld.sshfl [vmem:[%s3673_s17] sm:$0x33 pattern:$0x76325410] }
 0xaee   : > { %v3033_v11 = vmul.f32 -1.442695, %v2579_v51  ;;  %v3034_v17 = vmul.f32 -1.442695, %v2580_v10  ;;  %v2640_v10 = vcombine.high %v3035_v7, %v3035_v7 }
 0xaef   : > { %v1023_v12 = vpop.permute.xlu1 %1022 }
 0xaf0   : > { %v4057_v13 = vadd.f32 %v3789_v55, %v1023_v12  ;;  %v4060_v16 = vadd.f32 %v3791_v56, %v1023_v12  ;;  %3379 = vpow2.f32 %v3033_v11  ;;  %3036 = vmatprep.subr.msk.bf16.mxu1 %vm2647_vm6, %v2640_v10 }
 0xaf1   : > { %3381 = vpow2.f32 %v3032_v52  ;;  %v2649_v52 = vsel %vm2647_vm6, %v3035_v7, 0 }
 0xaf2   : > { %v1106_v18 = vadd.f32 %v4060_v16, %v4057_v13  ;;  %3383 = vpow2.f32 %v3034_v17  ;;  %2655 = vmatpush1.bf16.msra.mxu1 %v2649_v52 }
 0xaf3   : > { %v1018_v20 = vpop.permute.xlu0 %1017  ;;  %v1028_v24 = vpop.permute.xlu1 %1027  ;;  %2763 = vmatprep.subr.bf16.mxu1 %v3743_v15 }
 0xaf4   : > { %v4065_v25 = vadd.f32 %v3785_v53, %v1018_v20  ;;  %v4068_v28 = vadd.f32 %v3787_v54, %v1018_v20  ;;  %v4071_v55 = vadd.f32 %v3793_v57, %v1028_v24  ;;  %v4074_v56 = vadd.f32 %v3795_v58, %v1028_v24  ;;  %1107 = vadd.xlane.f32.xlu0 %v1106_v18  ;;  %v1116_v20 = vld [vmem:[%s4268_s4] sm:$0xff] }
 0xaf6   : > { %v1103_v30 = vadd.f32 %v4068_v28, %v4065_v25  ;;  %v1109_v19 = vadd.f32 %v4074_v56, %v4071_v55  ;;  %v3378_v27 = vpop.eup %3377 }
 0xaf7   : > { %v2593_v53 = vadd.f32 1.0, %v3378_v27  ;;  %v1117_v27 = vld [vmem:[%s4268_s4 + $0x8] sm:$0xff] }
 0xaf8   : > { %1104 = vadd.xlane.f32.xlu1 %v1103_v30  ;;  %1110 = vadd.xlane.f32.xlu0 %v1109_v19  ;;  %v1118_v30 = vld [vmem:[%s4268_s4 + $0x10] sm:$0xff] }
 0xaf9   : > { %3385 = vrcp.f32 %v2593_v53 }
 0xafa   : > { %v3380_v54 = vpop.eup %3379 }
 0xafb   : > { %v3382_v32 = vpop.eup %3381  ;;  %v2595_v57 = vadd.f32 1.0, %v3380_v54 }
 0xafc   : > { %v3384_v33 = vpop.eup %3383  ;;  %v2594_v58 = vadd.f32 1.0, %v3382_v32 }
 0xafd   : > { %v2596_v34 = vadd.f32 1.0, %v3384_v33  ;;  %3387 = vrcp.f32 %v2595_v57  ;;  %v1119_v33 = vld [vmem:[%s4268_s4 + $0x18] sm:$0xff]  ;;  %s4270_s4 = sld [smem:[#allocation12_spill]] }
 0xafe   : > { %3389 = vrcp.f32 %v2594_v58 }
 0xaff   : > { %3391 = vrcp.f32 %v2596_v34 }
 0xb03   : > { %v3386_v63 = vpop.eup %3385 }
 0xb07   : > { %v3388_v6 = vpop.eup %3387 }
 0xb08   : > { %v3390_v51 = vpop.eup %3389 }
 0xb09   : > { %2607 = vperm.xlu1 %3264, %v3386_v63   ;;  %v3392_v11 = vpop.eup %3391 }
 0xb0d   : > { %2617 = vperm.xlu1 %3264, %v3388_v6  }
 0xb0e   : > { %2612 = vperm.xlu0 %3263, %v3390_v51  }
 0xb11   : > { %2622 = vperm.xlu1 %3264, %v3392_v11  }
 0xb20   : > { %v1102_v12 = vpop.xlane.xlu0 %1101 }
 0xb21   : > { %v1112_v18 = vmul.f32 0.00390625, %v1102_v12 }
 0xb23   : > { %v1120_v54 = vmul.f32 %v1116_v20, %v1112_v18 }
 0xb25   : > { %v1125_v6 = vsel %vm1124_vm2, %v1120_v54, 0.0 }
 0xb81   : > { %v1108_v17 = vpop.xlane.xlu0 %1107 }
 0xb82   : > { %v1114_v24 = vmul.f32 0.00390625, %v1108_v17 }
 0xb84   : > { %v1122_v58 = vmul.f32 %v1118_v30, %v1114_v24 }
 0xb85   : > { %v1111_v19 = vpop.xlane.xlu0 %1110  ;;  %v1105_v53 = vpop.xlane.xlu1 %1104 }
 0xb86   : > { %v1115_v32 = vmul.f32 0.00390625, %v1111_v19  ;;  %v1113_v57 = vmul.f32 0.00390625, %v1105_v53  ;;  %v1128_v10 = vsel %vm1124_vm2, %v1122_v58, 0.0 }
 0xb88   : > { %v1121_v34 = vmul.f32 %v1117_v27, %v1113_v57  ;;  %v1123_v7 = vmul.f32 %v1119_v33, %v1115_v32 }
 0xb89   : > { %v2608_v63 = vpop.permute.xlu1 %2607 }
 0xb8a   : > { %v1126_v15 = vsel %vm1124_vm2, %v1121_v34, 0.0  ;;  %v1130_v17 = vsel %vm1124_vm2, %v1123_v7, 0.0  ;;  %v2625_v18 = vmul.f32 %v2608_v63, %v4006_v31  ;;  %v1142_v63 = vld [vmem:[%s4270_s4 + $0x8] sm:$0xff] }
 0xb8b   : > { %v1127_v51 = vadd.f32 %v1126_v15, %v1125_v6  ;;  %v1143_v6 = vld [vmem:[%s4270_s4 + $0x10] sm:$0xff] }
 0xb8d   : > { %v1129_v52 = vadd.f32 %v1128_v10, %v1127_v51  ;;  %v2613_v11 = vpop.permute.xlu0 %2612  ;;  %v2618_v12 = vpop.permute.xlu1 %2617  ;;  %v1144_v10 = vld [vmem:[%s4270_s4 + $0x18] sm:$0xff] }
 0xb8e   : > { %v2626_v20 = vmul.f32 %v2613_v11, %v4010_v36  ;;  %v2627_v36 = vmul.f32 %v2618_v12, %v4008_v35  ;;  %v1165_v12 = vld [vmem:[%s4271_s5] sm:$0xff] }
 0xb8f   : > { %v1131_v24 = vadd.f32 %v1130_v17, %v1129_v52  ;;  %v1166_v17 = vld [vmem:[%s4271_s5 + $0x8] sm:$0xff] }
 0xb90   : > { %v2629_v30 = vpack.c.bf16 %v2626_v20, %v2625_v18 }
 0xb91   : > { %v1132_v19 = vrot.slane %v1131_v24, 4  ;;  %v2623_v27 = vpop.permute.xlu1 %2622 }
 0xb92   : > { %3037 = vmatmul.mubr.msk.bf16.vlgmr.msra.gmra.mrb[16].mxu1 %vm1124_vm2, %v2629_v30  ;;  %v2628_v54 = vmul.f32 %v2623_v27, %v4016_v9  ;;  %v1141_v9 = vld [vmem:[%s4270_s4] sm:$0xff]  ;;  %s977_s4 = sand.u32 1, %s3463_s1  }
 0xb93   : > { %v1133_v53 = vadd.f32 %v1132_v19, %v1131_v24  ;;  %2696 = vmatprep.mubr.bf16.mxu1 %v3505_v29  ;;  %2764 = vmatpush1.bf16.msra.mxu1 %v3747_v22  ;;  %v1138_v29 = vld [vmem:[%s4269_s3] sm:$0x1]  ;;  %v1167_v19 = vld [vmem:[%s4271_s5 + $0x10] sm:$0xff]  ;;  %s4272_s3 = sld [smem:[#allocation7_spill]] }
 0xb94   : > { %2765 = vmatprep.subr.bf16.mxu1 %v3749_v23  ;;  %v2630_v57 = vpack.c.bf16 %v2628_v54, %v2627_v36  ;;  %v1168_v36 = vld [vmem:[%s4271_s5 + $0x18] sm:$0xff]  ;;  %s2936_s5 = sshll.u32 %s977_s4, 6 }
 0xb95   : > { %v1134_v31 = vrot.slane %v1133_v53, 2  ;;  %s979_s6 = scalar_lea.vmem [#allocation3], %s2936_s5  ;;  %s4157_s5 = scalar_lea.hbm %s3678_s29, %s3051_s9 }
 0xb96   : > { %s2838_s8 = sshll.u32 %s979_s6, 4  ;;  %s4154_s8 = int_to_ptr.vmem [resolvable:$true] %s2838_s8 }
 0xb97   : > { %v1135_v32 = vadd.f32 %v1134_v31, %v1133_v53  ;;  %2766 = vmatpush1.bf16.msra.mxu1 %v3756_v26  ;;  %s3409_s10 = scalar_lea.vmem %s4154_s8, 1024  ;;  %p3416_p0 = scmp.lt.s32.totalorder %s4154_s8, %s3414_s12 }
 0xb98   : > { %p3410_p11 = scmp.ne.s32.totalorder %s4154_s8, %s3409_s10  ;;  %p3417_p1 = scmp.lt.s32.totalorder %s3415_s13, %s3409_s10 }
 0xb99   : > { %v1136_v33 = vrot.slane %v1135_v32, 1  ;;  %v3339_v41 = vld [vmem:[%s4272_s3] ss:$8 sps:$4 sm:$0xff]   ;;  %v3342_v42 = vld [vmem:[%s4272_s3 + $0x14] ss:$8 sps:$4 sm:$0xff]  }
 0xb9a   : > { %3038 = vmatmul.mubr.msk.bf16.gmra.mrb[20].mxu1 %vm1124_vm2, %v2630_v57  ;;  %v3344_v43 = vld [vmem:[%s4272_s3 + $0x10] ss:$8 sps:$4 sm:$0xff]   ;;  %p3411_p12 = pnand %p3410_p11, %p3718_p5  ;;  %p3418_p2 = por %p3417_p1, %p3416_p0 }
 0xb9b   : > { %v1137_v58 = vadd.f32 %v1136_v33, %v1135_v32 }
 0xb9c   : > { %p3412_p13 = pneg %p3411_p12 }
 0xb9d   : > { %v1139_v34 = vadd.f32 %v1138_v29, %v1137_v58 }
 0xb9e   : > { %p3419_p3 = pnand %p3418_p2, %p3412_p13 }
 0xb9f   : > { %v1140_v22 = vmax.f32 %v1139_v34, 0.0 }
 0xba1   : > { %v1148_v23 = vrot.slane %v1140_v22, %v3822_v48 }
 0xba3   : > { %v1150_v35 = vmul.f32 %v1148_v23, %v1142_v63  ;;  %v1149_v7 = vmul.f32 %v1148_v23, %v1141_v9  ;;  %v1151_v51 = vmul.f32 %v1148_v23, %v1143_v6  ;;  %v1152_v11 = vmul.f32 %v1148_v23, %v1144_v10 }
 0xba5   : > { %v1156_v26 = vsel %vm1124_vm2, %v1150_v35, 0.0  ;;  %v1153_v15 = vsel %vm1124_vm2, %v1149_v7, 0.0  ;;  %v1159_v52 = vsel %vm1124_vm2, %v1151_v51, 0.0  ;;  %v1162_v48 = vsel %vm1124_vm2, %v1152_v11, 0.0 }
 0xba6   : > { %1157 = vadd.xlane.f32.xlu1 %v1156_v26  ;;  %1154 = vadd.xlane.f32.xlu0 %v1153_v15 }
 0xbaa   : > { %1160 = vadd.xlane.f32.xlu0 %v1159_v52 }
 0xbae   : > { %1163 = vadd.xlane.f32.xlu0 %v1162_v48 }
 0xc33   : > { %v1155_v18 = vpop.xlane.xlu0 %1154  ;;  %v1158_v20 = vpop.xlane.xlu1 %1157 }
 0xc34   : > { %v1169_v24 = vadd.f32 %v1165_v12, %v1155_v18  ;;  %v1170_v30 = vadd.f32 %v1166_v17, %v1158_v20 }
 0xc36   : > { %v2943_v27 = vmul.f32 -1.442695, %v1169_v24  ;;  %v2944_v53 = vmul.f32 -1.442695, %v1170_v30 }
 0xc37   : > { %v1161_v54 = vpop.xlane.xlu0 %1160 }
 0xc38   : > { %3393 = vpow2.f32 %v2943_v27  ;;  %v1171_v31 = vadd.f32 %v1167_v19, %v1161_v54 }
 0xc39   : > { %3395 = vpow2.f32 %v2944_v53  ;;  %v3341_v53 = vld [vmem:[%s4272_s3 + $0x4] ss:$8 sps:$4 sm:$0xff]   ;;  %s4159_s3 = scalar_lea.sflag [#allocation4], %s977_s4 }
 0xc3a   : > { %v2945_v32 = vmul.f32 -1.442695, %v1171_v31  ;;  %3043 = vmatprep.mubr.msk.bf16.mxu1 %vm1040_vm0, %v3341_v53 }
 0xc3b   : > { %v1164_v57 = vpop.xlane.xlu0 %1163 }
 0xc3c   : > { %3397 = vpow2.f32 %v2945_v32  ;;  %v1172_v33 = vadd.f32 %v1168_v36, %v1164_v57 }
 0xc3e   : > { %v2946_v29 = vmul.f32 -1.442695, %v1172_v33 }
 0xc40   : > { %3399 = vpow2.f32 %v2946_v29 }
 0xc42   : > { %v3394_v58 = vpop.eup %3393 }
 0xc43   : > { %v3396_v34 = vpop.eup %3395  ;;  %v1185_v22 = vadd.f32 1.0, %v3394_v58 }
 0xc44   : > { %v1186_v63 = vadd.f32 1.0, %v3396_v34 }
 0xc45   : > { %3401 = vrcp.f32 %v1185_v22 }
 0xc46   : > { %v3398_v9 = vpop.eup %3397  ;;  %3403 = vrcp.f32 %v1186_v63 }
 0xc47   : > { %v1187_v23 = vadd.f32 1.0, %v3398_v9 }
 0xc49   : > { %3405 = vrcp.f32 %v1187_v23 }
 0xc4a   : > { %v3400_v6 = vpop.eup %3399 }
 0xc4b   : > { %v1188_v35 = vadd.f32 1.0, %v3400_v6 }
 0xc4d   : > { %3407 = vrcp.f32 %v1188_v35 }
 0xc4f   : > { %v3402_v7 = vpop.eup %3401 }
 0xc50   : > { %v3404_v26 = vpop.eup %3403  ;;  %1199 = vperm.xlu1 %3264, %v3402_v7  }
 0xc51   : > { %1204 = vperm.xlu0 %3263, %v3404_v26  }
 0xc53   : > { %v3406_v15 = vpop.eup %3405 }
 0xc54   : > { %1209 = vperm.xlu1 %3264, %v3406_v15  }
 0xc57   : > { %v3408_v51 = vpop.eup %3407 }
 0xc58   : > { %1214 = vperm.xlu1 %3264, %v3408_v51  }
 0xc65   : > { %v2688_v10 = vpop.f32.mrb[16].mxu1 }
 0xc66   : > { %v2690_v52 = vpop.f32.mrb[17].mxu1 }
 0xc67   : > { %v2692_v11 = vpop.f32.mrb[18].mxu1 }
 0xc68   : > { %v2707_v48 = vpack.c.bf16 %v2692_v11, %v2688_v10  ;;  %v2694_v12 = vpop.f32.mrb[19].mxu1 }
 0xc69   : > { %v2708_v17 = vpack.c.bf16 %v2694_v12, %v2690_v52 }
 0xc6d   : > { %v2698_v18 = vpop.f32.mrb[20].mxu1 }
 0xc6e   : > { %v2700_v20 = vpop.f32.mrb[21].mxu1 }
 0xc6f   : > { %v2702_v24 = vpop.f32.mrb[22].mxu1 }
 0xc70   : > { %v2709_v30 = vpack.c.bf16 %v2702_v24, %v2698_v18  ;;  %v2704_v19 = vpop.f32.mrb[23].mxu1 }
 0xc71   : > { %v2710_v27 = vpack.c.bf16 %v2704_v19, %v2700_v20 }
 0xccf   : > { %v1200_v54 = vpop.permute.xlu1 %1199 }
 0xcd0   : > { %v1205_v31 = vpop.permute.xlu0 %1204  ;;  %v1217_v36 = vmul.f32 %v1200_v54, %v4045_v21  ;;  %v1218_v32 = vmul.f32 %v1200_v54, %v4048_v14 }
 0xcd1   : > { %v1219_v57 = vmul.f32 %v1205_v31, %v4065_v25  ;;  %v1220_v33 = vmul.f32 %v1205_v31, %v4068_v28 }
 0xcd3   : > { %v1225_v29 = vpack.c.bf16 %v1219_v57, %v1217_v36  ;;  %v1226_v58 = vpack.c.bf16 %v1220_v33, %v1218_v32  ;;  %v1210_v34 = vpop.permute.xlu1 %1209 }
 0xcd4   : > { %v1221_v63 = vmul.f32 %v1210_v34, %v4057_v13  ;;  %v1222_v9 = vmul.f32 %v1210_v34, %v4060_v16 }
 0xcd5   : > { %2767 = vmatprep.subr.bf16.mxu1 %v1226_v58 }
 0xcd6   : > { %2768 = vmatpush1.bf16.msra.mxu1 %v1225_v29 }
 0xcd7   : > { %v1215_v22 = vpop.permute.xlu1 %1214 }
 0xcd8   : > { %v1223_v23 = vmul.f32 %v1215_v22, %v4071_v55  ;;  %v1224_v21 = vmul.f32 %v1215_v22, %v4074_v56 }
 0xcda   : > { %v1227_v14 = vpack.c.bf16 %v1223_v23, %v1221_v63  ;;  %v1228_v6 = vpack.c.bf16 %v1224_v21, %v1222_v9 }
 0xcdc   : > { %2769 = vmatprep.subr.bf16.mxu1 %v1228_v6 }
 0xcdd   : > { %2770 = vmatpush1.bf16.msra.mxu1 %v1227_v14 }
 0xcde   : > { %2771 = vmatprep.subr.bf16.mxu1 %v1736_v46 }
 0xce1   : > { %2772 = vmatpush1.bf16.msra.mxu1 %v1735_v44 }
 0xce2   : > { %2773 = vmatprep.subr.bf16.mxu1 %v1738_v61 }
 0xce5   : > { %2774 = vmatpush1.bf16.msra.mxu1 %v1737_v59 }
 0xce6   : > { %2775 = vmatprep.subr.bf16.mxu1 %v2230_v39 }
 0xce9   : > { %2776 = vmatpush1.bf16.msra.mxu1 %v2229_v37 }
 0xcea   : > { %2777 = vmatprep.subr.bf16.mxu1 %v2232_v5 }
 0xced   : > { %2778 = vmatpush1.bf16.msra.mxu1 %v2231_v1 }
 0xcee   : > { %2779 = vmatprep.subr.bf16.mxu1 %v2708_v17 }
 0xcf1   : > { %2780 = vmatpush1.bf16.msra.mxu1 %v2707_v48 }
 0xcf2   : > { %2781 = vmatprep.subr.bf16.mxu1 %v2710_v27 }
 0xcf5   : > { %2782 = vmatpush1.bf16.msra.mxu1 %v2709_v30 }
 0xcf8   : > { %2796 = vmatmul.mubr.bf16.vlgmr.msra.gmra.mrb[24].mxu1 %v3339_v41 }
 0xcf9   : > { %3044 = vmatprep.mubr.msk.bf16.mxu1 %vm1040_vm0, %v3342_v42 }
 0xd00   : > { %2806 = vmatmul.mubr.bf16.gmra.mrb[28].mxu1 %v3344_v43 }
 0xdcb   : > { %v2797_v44 = vpop.f32.mrb[24].mxu1 }
 0xdcc   : > { %2816 = vst [vmem:[%s979_s6] sm:$0xff] %v2797_v44  ;;  %v2799_v45 = vpop.f32.mrb[25].mxu1 }
 0xdcd   : > { %2817 = vst [vmem:[%s979_s6 + $0x8] sm:$0xff] %v2799_v45  ;;  %v2801_v46 = vpop.f32.mrb[26].mxu1 }
 0xdce   : > { %2818 = vst [vmem:[%s979_s6 + $0x10] sm:$0xff] %v2801_v46  ;;  %v2803_v47 = vpop.f32.mrb[27].mxu1 }
 0xdcf   : > { %2819 = vst [vmem:[%s979_s6 + $0x18] sm:$0xff] %v2803_v47 }
 0xdd3   : > { %v2807_v49 = vpop.f32.mrb[28].mxu1 }
 0xdd4   : > { %2820 = vst [vmem:[%s979_s6 + $0x20] sm:$0xff] %v2807_v49  ;;  %v2809_v50 = vpop.f32.mrb[29].mxu1 }
 0xdd5   : > { %2821 = vst [vmem:[%s979_s6 + $0x28] sm:$0xff] %v2809_v50  ;;  %v2811_v59 = vpop.f32.mrb[30].mxu1 }
 0xdd6   : > { %2822 = vst [vmem:[%s979_s6 + $0x30] sm:$0xff] %v2811_v59  ;;  %v2813_v60 = vpop.f32.mrb[31].mxu1 }
 0xdd7   : > { %2823 = vst [vmem:[%s979_s6 + $0x38] sm:$0xff] %v2813_v60 }
 0xdd8   : > { %3422 = shalt.err (!%p3419_p3)
}
 0xdd9   : > { %s3423_s9 = scalar_lea.hbm %s4157_s5, 1024  ;;  %s3427_s6 = scalar_lea.hbm %s3678_s29, 2048 }
 0xdda   : > { %p3424_p4 = scmp.ne.s32.totalorder %s4157_s5, %s3423_s9  ;;  %p3428_p9 = scmp.lt.u32.totalorder %s4157_s5, %s3678_s29 }
 0xddb   : > { %p3429_p10 = scmp.lt.u32.totalorder %s3427_s6, %s3423_s9  ;;  %p3431_p12 = scmp.lt.u32.totalorder %s3423_s9, %s4157_s5 }
 0xddc   : > { %p3425_p7 = pnand %p3424_p4, %p3718_p5 }
 0xddd   : > { %p3430_p11 = por %p3429_p10, %p3428_p9 }
 0xdde   : > { %p3426_p8 = pneg %p3425_p7 }
 0xddf   : > { %p3432_p0 = por %p3431_p12, %p3430_p11 }
 0xde1   : > { %p3433_p13 = pnand %p3432_p0, %p3426_p8 }
 0xde3   : > { %3436 = shalt.err (!%p3433_p13)
}
 0xde4   : > { %s3508_s13 = smov 256   ;;  %s3509_s12 = smov 16  }
 0xde5   : > { %3188 = dma.vmem_to_hbm [thread:$0]  (%p3718_p5), %s4154_s8, 1024, %s4157_s5, %s4159_s3, %s3508_s13, %s3508_s13, %s3509_s12  }
 0xde6 PF: > { %p3194_p1 = scmp.ge.s32.totalorder %s3471_s7, 2  ;;  %s2853_s10 = sand.u32 1, %s3459_s28  }
 0xde7   : > { %s2854_s4 = scalar_lea.sflag [#allocation4], %s2853_s10 }
 0xde8   : > { %p3191_p2 = pnand %p3194_p1, %p3722_p6 }
 0xdea   : > { %3454 = dma.done.wait (!%p3191_p2), %s2854_s4, 1024  }
 0xdeb   : > { %3456 = vsyncadd (!%p3191_p2), %s2854_s4, 4294966272  ;;  %p75_p3 = scmp.ge.s32.totalorder %s3705_s11, 4   ;;  %s4273_s28 = smov %s3463_s1 }
 0xdec   : > { %s4274_s1 = smov %s3467_s2  ;;  %s4275_s2 = smov %s3716_s18 }
 0xded   : > { %s4276_s7 = smov %s3705_s11  ;;  %77 = sbr.rel (!%p75_p3) target bundleno = 62 (0x3e), region = 215 }
 0xdf4   :  { %2859 = vsyncpa [#allocation4], 1 }
 0xdf5   :  { %2861 = vsyncpa [#allocation4 + $0x1], 1 }

</bundles_post_ra>
